<compile_context>
chip_gen: v6e
topology: v6e:2x2x1
jax: 0.10.0
libtpu: 0.0.40
codegen_flags: <defaults>
</compile_context>

<pallas_src>
import functools

import jax
import jax.numpy as jnp
from jax import lax
from jax.experimental import pallas as pl
from jax.experimental.pallas import tpu as pltpu


def _linear_attention_kernel(x_ref, ind_ref, indt_ref, mask_ref,
                             wq_ref, bq_ref, wk_ref, bk_ref,
                             wv_ref, bv_ref, wp_ref, bp_ref,
                             o_ref, *, approx, compute_dtype):
    bpb, T, C = x_ref.shape          # batches in this block, seq len, embed dim
    R = bpb * T
    cd = compute_dtype

    def mx(a):
        # Cast an MXU operand to the fast compute dtype (bf16 on v6e/v7x);
        # accumulation stays f32 via preferred_element_type.
        return a if cd is None else a.astype(cd)

    ind = ind_ref[...]               # (C, H) 0/1 head indicator
    indt = indt_ref[...]             # (H, C)
    head_mask = mask_ref[...]        # (C, C) block-diagonal 0/1

    x2 = x_ref[...].reshape(R, C)

    # q / k / v projections for ALL rows of the block at once (MXU, f32 accumulation).
    q = jnp.dot(mx(x2), mx(wq_ref[...]), preferred_element_type=jnp.float32) + bq_ref[...]
    k = jnp.dot(mx(x2), mx(wk_ref[...]), preferred_element_type=jnp.float32) + bk_ref[...]
    v = jnp.dot(mx(x2), mx(wv_ref[...]), preferred_element_type=jnp.float32) + bv_ref[...]

    def seg_softmax(a):
        # Per-head softmax along the lane dim, batched over all heads with one thin
        # (R,C)x(C,H) segment-sum matmul.  Only R*H EUP reciprocals (not R*C).
        # Subtracting the row-wide max (>= every head max) is exact by shift invariance;
        # if one head's logits sit ~88+ below the row max its exp() underflows, and the
        # maximum() guard keeps that head finite (0) instead of 0*inf = NaN.
        m = jnp.max(a, axis=-1, keepdims=True)
        e = jnp.exp(a - m)
        denom = jnp.dot(e, ind, preferred_element_type=jnp.float32)            # (R, H)
        inv = pl.reciprocal(jnp.maximum(denom, 1e-30), approx=approx)
        # Exact broadcast back across each head's columns (0/1 indicator matmul).
        return e * jnp.dot(inv, indt, preferred_element_type=jnp.float32)      # (R, C)

    q_s = seg_softmax(q)
    k_s = seg_softmax(k)

    # Batched attention core over the bpb batches (no per-batch Python loop, no y scratch).
    q3 = q_s.reshape(bpb, T, C)
    k3 = k_s.reshape(bpb, T, C)
    v3 = v.reshape(bpb, T, C)

    k_cumsum = jnp.sum(k3, axis=1, keepdims=True)                              # (bpb, 1, C)
    d_small = lax.dot_general(mx(q3 * k_cumsum), mx(ind),
                              (((2,), (0,)), ((), ())),
                              preferred_element_type=jnp.float32)              # (bpb, T, H)
    d_inv = pl.reciprocal(d_small, approx=approx)                              # (bpb, T, H)
    d_inv_full = lax.dot_general(d_inv, indt, (((2,), (0,)), ((), ())),
                                 preferred_element_type=jnp.float32)           # (bpb, T, C)

    # context = k^T @ v per batch (contract the sequence dim, batch over bpb), then
    # block-diagonally masked so heads don't mix.
    ctx = lax.dot_general(mx(k3), mx(v3), (((1,), (1,)), ((0,), (0,))),
                          preferred_element_type=jnp.float32)                  # (bpb, C, C)
    ctx = ctx * head_mask

    y3 = lax.dot_general(mx(q3), mx(ctx), (((2,), (1,)), ((0,), (0,))),
                         preferred_element_type=jnp.float32) * d_inv_full + q3  # (bpb, T, C)

    # Output projection, stored directly to the (bpb, T, C) block.
    out = lax.dot_general(mx(y3), mx(wp_ref[...]), (((2,), (0,)), ((), ())),
                          preferred_element_type=jnp.float32) + bp_ref[...]
    o_ref[...] = out.astype(o_ref.dtype)


def _vmem_capacity_bytes():
    try:
        cap = getattr(pltpu.get_tpu_info(), "vmem_capacity_bytes", None)
        if cap:
            return int(cap)
    except Exception:
        pass
    return 64 * 1024 * 1024   # conservative fallback (v7x per-TensorCore VMEM)


def _has_two_tensorcores():
    # v4 / v5p / v7x have 2 TensorCores per chip; v5e / v6e have 1.
    try:
        kind = jax.devices()[0].device_kind.lower()
    except Exception:
        return True
    return any(t in kind for t in ("v4", "v5p", "v7", "tpu7"))


def _est_vmem_bytes(bpb, T, C, n_head, x_bytes, w_bytes, cd_bytes):
    R = bpb * T
    io = 2 * 2 * R * C * x_bytes                    # double-buffered x + out blocks
    wgt = 2 * 4 * (C * C + C) * w_bytes             # weights + biases (worst case 2 bufs)
    aux = (C * C + 2 * C * n_head) * 4              # head_mask + indicator + indicator^T
    inter = 10 * R * C * 4 + 2 * bpb * C * C * 4    # f32 intermediates + per-batch contexts
    if cd_bytes:
        inter += 5 * R * C * cd_bytes + bpb * C * C * cd_bytes
    return io + wgt + aux + inter


def _pick_batches_per_block(B, T, C, n_head, x_bytes, w_bytes, cd_bytes, vmem_budget, two_tc):
    """Largest divisor of B whose block fits the VMEM budget (fills the MXU row dim);
    keep >=2 parallel grid points only on chips that actually have 2 TensorCores."""
    best = 1
    for bpb in range(1, B + 1):
        if B % bpb:
            continue
        if two_tc and B >= 2 and (B // bpb) < 2:
            continue
        if _est_vmem_bytes(bpb, T, C, n_head, x_bytes, w_bytes, cd_bytes) > vmem_budget:
            continue
        best = bpb
    return best


def linear_attention(x, params, n_head, *, approx_reciprocal=True,
                     compute_dtype=None, batches_per_block=None):
    """x: (B, T, C). params: (C, C) weights in (in, out) layout and (1, C) biases.
    compute_dtype=jnp.bfloat16 enables the MXU fast path (accumulation stays f32)."""
    B, T, C = x.shape
    assert C % n_head == 0
    D = C // n_head

    x_bytes = jnp.dtype(x.dtype).itemsize
    w_bytes = jnp.dtype(params["wq"].dtype).itemsize
    cd_bytes = jnp.dtype(compute_dtype).itemsize if compute_dtype is not None else None

    cap = _vmem_capacity_bytes()
    two_tc = _has_two_tensorcores()
    if batches_per_block is None:
        bpb = _pick_batches_per_block(B, T, C, n_head, x_bytes, w_bytes, cd_bytes,
                                      int(0.7 * cap), two_tc)
    else:
        bpb = batches_per_block
    assert B % bpb == 0
    grid = (B // bpb,)

    # Capacity-aware VMEM budget: never above ~85% of physical VMEM (v7x = 64 MiB/TC).
    est = _est_vmem_bytes(bpb, T, C, n_head, x_bytes, w_bytes, cd_bytes)
    vmem_limit = int(min(0.85 * cap, max(32 << 20, 2 * est + (4 << 20))))

    # Head indicator / mask built once in the wrapper (constant inputs, fetched once).
    heads = jnp.arange(C, dtype=jnp.int32) // D
    ind = (heads[:, None] == jnp.arange(n_head, dtype=jnp.int32)[None, :]).astype(jnp.float32)
    ind_t = ind.T                                                   # (H, C)
    head_mask = (heads[:, None] == heads[None, :]).astype(jnp.float32)  # (C, C)

    kernel = functools.partial(_linear_attention_kernel,
                               approx=approx_reciprocal, compute_dtype=compute_dtype)

    x_spec = pl.BlockSpec((bpb, T, C), lambda b: (b, 0, 0))
    out_spec = pl.BlockSpec((bpb, T, C), lambda b: (b, 0, 0))

    def _call(single_buffer_consts):
        def const_spec(shape):
            # Constant index_map -> fetched once; single-buffer to halve weight VMEM.
            if single_buffer_consts:
                return pl.BlockSpec(shape, lambda b: (0,) * len(shape),
                                    pipeline_mode=pl.Buffered(1))
            return pl.BlockSpec(shape, lambda b: (0,) * len(shape))

        w_spec = const_spec((C, C))
        b_spec = const_spec((1, C))
        return pl.pallas_call(
            kernel,
            out_shape=jax.ShapeDtypeStruct((B, T, C), x.dtype),
            grid_spec=pltpu.PrefetchScalarGridSpec(
                num_scalar_prefetch=0,
                grid=grid,
                in_specs=[
                    x_spec,
                    const_spec((C, n_head)),     # indicator
                    const_spec((n_head, C)),     # indicator^T
                    const_spec((C, C)),          # block-diagonal head mask
                    w_spec, b_spec,              # query
                    w_spec, b_spec,              # key
                    w_spec, b_spec,              # value
                    w_spec, b_spec,              # proj
                ],
                out_specs=out_spec,
            ),
            compiler_params=pltpu.CompilerParams(
                dimension_semantics=("parallel",),
                vmem_limit_bytes=vmem_limit,
            ),
        )

    args = (x, ind, ind_t, head_mask,
            params["wq"], params["bq"], params["wk"], params["bk"],
            params["wv"], params["bv"], params["wp"], params["bp"])
    try:
        return jax.block_until_ready(_call(True)(*args))
    except Exception:
        # Fallback if the installed jax rejects single-buffered constant blocks.
        return jax.block_until_ready(_call(False)(*args))


def _reference(x, params, n_head):
    """Pure-JAX mirror of the PyTorch forward (attn_type='l1', eval mode)."""
    B, T, C = x.shape
    D = C // n_head

    def lin(a, w, b):
        return a @ w + b

    q = lin(x, params["wq"], params["bq"]).reshape(B, T, n_head, D).transpose(0, 2, 1, 3)
    k = lin(x, params["wk"], params["bk"]).reshape(B, T, n_head, D).transpose(0, 2, 1, 3)
    v = lin(x, params["wv"], params["bv"]).reshape(B, T, n_head, D).transpose(0, 2, 1, 3)

    q = jax.nn.softmax(q, axis=-1)
    k = jax.nn.softmax(k, axis=-1)
    k_cumsum = jnp.sum(k, axis=-2, keepdims=True)
    d_inv = 1.0 / jnp.sum(q * k_cumsum, axis=-1, keepdims=True)
    context = jnp.swapaxes(k, -2, -1) @ v
    y = q @ context * d_inv + q
    y = y.transpose(0, 2, 1, 3).reshape(B, T, C)
    return lin(y, params["wp"], params["bp"])


if __name__ == "__main__":
    # config: n_embd=32, n_head=4 (attn_pdrop irrelevant at inference)
    B, T, C, n_head = 2, 8, 32, 4

    key = jax.random.PRNGKey(0)
    keys = jax.random.split(key, 9)
    scale = 1.0 / (C ** 0.5)
    params = {
        "wq": jax.random.normal(keys[0], (C, C), jnp.float32) * scale,
        "bq": jax.random.normal(keys[1], (1, C), jnp.float32) * 0.01,
        "wk": jax.random.normal(keys[2], (C, C), jnp.float32) * scale,
        "bk": jax.random.normal(keys[3], (1, C), jnp.float32) * 0.01,
        "wv": jax.random.normal(keys[4], (C, C), jnp.float32) * scale,
        "bv": jax.random.normal(keys[5], (1, C), jnp.float32) * 0.01,
        "wp": jax.random.normal(keys[6], (C, C), jnp.float32) * scale,
        "bp": jax.random.normal(keys[7], (1, C), jnp.float32) * 0.01,
    }
    x = jax.random.normal(keys[8], (B, T, C), jnp.float32)

    ref = _reference(x, params, n_head)

    # Exact path: f32 MXU operands + exact reciprocal -> tight check vs the PyTorch reference.
    out_exact = linear_attention(x, params, n_head,
                                 approx_reciprocal=False, compute_dtype=None)
    assert out_exact.shape == (B, T, C)
    assert jnp.allclose(out_exact, ref, atol=1e-4, rtol=1e-4), "mismatch (exact f32 path)"

    # Fast path: bf16 MXU operands + EUP approximate reciprocal (inference); looser tolerance.
    out_fast = linear_attention(x, params, n_head,
                                approx_reciprocal=True, compute_dtype=jnp.bfloat16)
    assert jnp.allclose(out_fast, ref, atol=5e-2, rtol=5e-2), "mismatch (bf16 + approx path)"

    print("KERNEL_OK")
</pallas_src>

<mosaic_0001>
module attributes {stable_mosaic.version = 11 : i64} {
  func.func @_linear_attention_kernel(%arg0: i32, %arg1: memref<2x8x32xf32, #tpu.memory_space<vmem>>, %arg2: memref<32x4xf32, #tpu.memory_space<vmem>>, %arg3: memref<4x32xf32, #tpu.memory_space<vmem>>, %arg4: memref<32x32xf32, #tpu.memory_space<vmem>>, %arg5: memref<32x32xf32, #tpu.memory_space<vmem>>, %arg6: memref<1x32xf32, #tpu.memory_space<vmem>>, %arg7: memref<32x32xf32, #tpu.memory_space<vmem>>, %arg8: memref<1x32xf32, #tpu.memory_space<vmem>>, %arg9: memref<32x32xf32, #tpu.memory_space<vmem>>, %arg10: memref<1x32xf32, #tpu.memory_space<vmem>>, %arg11: memref<32x32xf32, #tpu.memory_space<vmem>>, %arg12: memref<1x32xf32, #tpu.memory_space<vmem>>, %arg13: memref<2x8x32xf32, #tpu.memory_space<vmem>>) attributes {dimension_semantics = [#tpu.dimension_semantics<parallel>], iteration_bounds = array<i64: 1>, scalar_prefetch = 0 : i64, scratch_operands = 0 : i64, tpu.core_type = #tpu.core_type<tc>, window_params = [{transform_indices = @transform_0, window_bounds = array<i64: 2, 8, 32>}, {pipeline_mode = #tpu.pipeline_mode<synchronous>, transform_indices = @transform_1, window_bounds = array<i64: 32, 4>}, {pipeline_mode = #tpu.pipeline_mode<synchronous>, transform_indices = @transform_2, window_bounds = array<i64: 4, 32>}, {pipeline_mode = #tpu.pipeline_mode<synchronous>, transform_indices = @transform_3, window_bounds = array<i64: 32, 32>}, {pipeline_mode = #tpu.pipeline_mode<synchronous>, transform_indices = @transform_4, window_bounds = array<i64: 32, 32>}, {pipeline_mode = #tpu.pipeline_mode<synchronous>, transform_indices = @transform_5, window_bounds = array<i64: 1, 32>}, {pipeline_mode = #tpu.pipeline_mode<synchronous>, transform_indices = @transform_6, window_bounds = array<i64: 32, 32>}, {pipeline_mode = #tpu.pipeline_mode<synchronous>, transform_indices = @transform_7, window_bounds = array<i64: 1, 32>}, {pipeline_mode = #tpu.pipeline_mode<synchronous>, transform_indices = @transform_8, window_bounds = array<i64: 32, 32>}, {pipeline_mode = #tpu.pipeline_mode<synchronous>, transform_indices = @transform_9, window_bounds = array<i64: 1, 32>}, {pipeline_mode = #tpu.pipeline_mode<synchronous>, transform_indices = @transform_10, window_bounds = array<i64: 32, 32>}, {pipeline_mode = #tpu.pipeline_mode<synchronous>, transform_indices = @transform_11, window_bounds = array<i64: 1, 32>}, {transform_indices = @transform_12, window_bounds = array<i64: 2, 8, 32>}]} {
    %c0 = arith.constant 0 : index
    %c0_0 = arith.constant 0 : index
    %0 = vector.load %arg2[%c0, %c0_0] : memref<32x4xf32, #tpu.memory_space<vmem>>, vector<32x4xf32>
    %c0_1 = arith.constant 0 : index
    %c0_2 = arith.constant 0 : index
    %1 = vector.load %arg3[%c0_1, %c0_2] : memref<4x32xf32, #tpu.memory_space<vmem>>, vector<4x32xf32>
    %c0_3 = arith.constant 0 : index
    %c0_4 = arith.constant 0 : index
    %2 = vector.load %arg4[%c0_3, %c0_4] : memref<32x32xf32, #tpu.memory_space<vmem>>, vector<32x32xf32>
    %c0_5 = arith.constant 0 : index
    %c0_6 = arith.constant 0 : index
    %c0_7 = arith.constant 0 : index
    %3 = vector.load %arg1[%c0_5, %c0_6, %c0_7] : memref<2x8x32xf32, #tpu.memory_space<vmem>>, vector<2x8x32xf32>
    %4 = vector.shape_cast %3 : vector<2x8x32xf32> to vector<16x32xf32>
    %c0_8 = arith.constant 0 : index
    %c0_9 = arith.constant 0 : index
    %5 = vector.load %arg5[%c0_8, %c0_9] : memref<32x32xf32, #tpu.memory_space<vmem>>, vector<32x32xf32>
    %cst = arith.constant dense<0.000000e+00> : vector<16x32xf32>
    %6 = tpu.matmul %4, %5, %cst {dimension_numbers = #tpu.dot_dimension_numbers<[1], [0], [0], [1], [0, 0, 1, 1], [], []>} : vector<16x32xf32>, vector<32x32xf32>, vector<16x32xf32> -> vector<16x32xf32>
    %c0_10 = arith.constant 0 : index
    %c0_11 = arith.constant 0 : index
    %7 = vector.load %arg6[%c0_10, %c0_11] : memref<1x32xf32, #tpu.memory_space<vmem>>, vector<1x32xf32>
    %8 = vector.broadcast %7 : vector<1x32xf32> to vector<16x32xf32>
    %9 = arith.addf %6, %8 : vector<16x32xf32>
    %c0_12 = arith.constant 0 : index
    %c0_13 = arith.constant 0 : index
    %10 = vector.load %arg7[%c0_12, %c0_13] : memref<32x32xf32, #tpu.memory_space<vmem>>, vector<32x32xf32>
    %cst_14 = arith.constant dense<0.000000e+00> : vector<16x32xf32>
    %11 = tpu.matmul %4, %10, %cst_14 {dimension_numbers = #tpu.dot_dimension_numbers<[1], [0], [0], [1], [0, 0, 1, 1], [], []>} : vector<16x32xf32>, vector<32x32xf32>, vector<16x32xf32> -> vector<16x32xf32>
    %c0_15 = arith.constant 0 : index
    %c0_16 = arith.constant 0 : index
    %12 = vector.load %arg8[%c0_15, %c0_16] : memref<1x32xf32, #tpu.memory_space<vmem>>, vector<1x32xf32>
    %13 = vector.broadcast %12 : vector<1x32xf32> to vector<16x32xf32>
    %14 = arith.addf %11, %13 : vector<16x32xf32>
    %c0_17 = arith.constant 0 : index
    %c0_18 = arith.constant 0 : index
    %15 = vector.load %arg9[%c0_17, %c0_18] : memref<32x32xf32, #tpu.memory_space<vmem>>, vector<32x32xf32>
    %cst_19 = arith.constant dense<0.000000e+00> : vector<16x32xf32>
    %16 = tpu.matmul %4, %15, %cst_19 {dimension_numbers = #tpu.dot_dimension_numbers<[1], [0], [0], [1], [0, 0, 1, 1], [], []>} : vector<16x32xf32>, vector<32x32xf32>, vector<16x32xf32> -> vector<16x32xf32>
    %c0_20 = arith.constant 0 : index
    %c0_21 = arith.constant 0 : index
    %17 = vector.load %arg10[%c0_20, %c0_21] : memref<1x32xf32, #tpu.memory_space<vmem>>, vector<1x32xf32>
    %18 = vector.broadcast %17 : vector<1x32xf32> to vector<16x32xf32>
    %19 = arith.addf %16, %18 : vector<16x32xf32>
    %cst_22 = arith.constant dense<0xFF800000> : vector<16xf32>
    %20 = vector.multi_reduction <maximumf>, %9, %cst_22 [1] : vector<16x32xf32> to vector<16xf32>
    %21 = vector.shape_cast %20 : vector<16xf32> to vector<16x1xf32>
    %22 = vector.broadcast %21 : vector<16x1xf32> to vector<16x32xf32>
    %23 = arith.subf %9, %22 : vector<16x32xf32>
    %24 = math.exp %23 : vector<16x32xf32>
    %cst_23 = arith.constant dense<0.000000e+00> : vector<16x4xf32>
    %25 = tpu.matmul %24, %0, %cst_23 {dimension_numbers = #tpu.dot_dimension_numbers<[1], [0], [0], [1], [0, 0, 1, 1], [], []>} : vector<16x32xf32>, vector<32x4xf32>, vector<16x4xf32> -> vector<16x4xf32>
    %cst_24 = arith.constant 1.000000e-30 : f32
    %26 = vector.broadcast %cst_24 : f32 to vector<16x4xf32>
    %27 = arith.maximumf %25, %26 : vector<16x4xf32>
    %28 = tpu.reciprocal %27 : vector<16x4xf32> -> vector<16x4xf32>
    %cst_25 = arith.constant dense<0.000000e+00> : vector<16x32xf32>
    %29 = tpu.matmul %28, %1, %cst_25 {dimension_numbers = #tpu.dot_dimension_numbers<[1], [0], [0], [1], [0, 0, 1, 1], [], []>} : vector<16x4xf32>, vector<4x32xf32>, vector<16x32xf32> -> vector<16x32xf32>
    %30 = arith.mulf %24, %29 : vector<16x32xf32>
    %cst_26 = arith.constant dense<0xFF800000> : vector<16xf32>
    %31 = vector.multi_reduction <maximumf>, %14, %cst_26 [1] : vector<16x32xf32> to vector<16xf32>
    %32 = vector.shape_cast %31 : vector<16xf32> to vector<16x1xf32>
    %33 = vector.broadcast %32 : vector<16x1xf32> to vector<16x32xf32>
    %34 = arith.subf %14, %33 : vector<16x32xf32>
    %35 = math.exp %34 : vector<16x32xf32>
    %cst_27 = arith.constant dense<0.000000e+00> : vector<16x4xf32>
    %36 = tpu.matmul %35, %0, %cst_27 {dimension_numbers = #tpu.dot_dimension_numbers<[1], [0], [0], [1], [0, 0, 1, 1], [], []>} : vector<16x32xf32>, vector<32x4xf32>, vector<16x4xf32> -> vector<16x4xf32>
    %cst_28 = arith.constant 1.000000e-30 : f32
    %37 = vector.broadcast %cst_28 : f32 to vector<16x4xf32>
    %38 = arith.maximumf %36, %37 : vector<16x4xf32>
    %39 = tpu.reciprocal %38 : vector<16x4xf32> -> vector<16x4xf32>
    %cst_29 = arith.constant dense<0.000000e+00> : vector<16x32xf32>
    %40 = tpu.matmul %39, %1, %cst_29 {dimension_numbers = #tpu.dot_dimension_numbers<[1], [0], [0], [1], [0, 0, 1, 1], [], []>} : vector<16x4xf32>, vector<4x32xf32>, vector<16x32xf32> -> vector<16x32xf32>
    %41 = arith.mulf %35, %40 : vector<16x32xf32>
    %42 = vector.shape_cast %30 : vector<16x32xf32> to vector<2x8x32xf32>
    %43 = vector.shape_cast %41 : vector<16x32xf32> to vector<2x8x32xf32>
    %44 = vector.shape_cast %19 : vector<16x32xf32> to vector<2x8x32xf32>
    %cst_30 = arith.constant dense<0.000000e+00> : vector<2x32xf32>
    %45 = vector.multi_reduction <add>, %43, %cst_30 [1] : vector<2x8x32xf32> to vector<2x32xf32>
    %46 = vector.shape_cast %45 : vector<2x32xf32> to vector<2x1x32xf32>
    %47 = vector.broadcast %46 : vector<2x1x32xf32> to vector<2x8x32xf32>
    %48 = arith.mulf %42, %47 : vector<2x8x32xf32>
    %cst_31 = arith.constant dense<0.000000e+00> : vector<2x8x4xf32>
    %49 = tpu.matmul %48, %0, %cst_31 {dimension_numbers = #tpu.dot_dimension_numbers<[2], [0], [0, 1], [1], [0, 0, 0, 1, 1, 1], [], []>} : vector<2x8x32xf32>, vector<32x4xf32>, vector<2x8x4xf32> -> vector<2x8x4xf32>
    %50 = tpu.reciprocal %49 : vector<2x8x4xf32> -> vector<2x8x4xf32>
    %cst_32 = arith.constant dense<0.000000e+00> : vector<2x8x32xf32>
    %51 = tpu.matmul %50, %1, %cst_32 {dimension_numbers = #tpu.dot_dimension_numbers<[2], [0], [0, 1], [1], [0, 0, 0, 1, 1, 1], [], []>} : vector<2x8x4xf32>, vector<4x32xf32>, vector<2x8x32xf32> -> vector<2x8x32xf32>
    %cst_33 = arith.constant dense<0.000000e+00> : vector<2x32x32xf32>
    %52 = tpu.matmul %43, %44, %cst_33 {dimension_numbers = #tpu.dot_dimension_numbers<[1], [1], [2], [2], [0, 0, 0, 2, 1, 2], [0], [0]>} : vector<2x8x32xf32>, vector<2x8x32xf32>, vector<2x32x32xf32> -> vector<2x32x32xf32>
    %53 = vector.shape_cast %2 : vector<32x32xf32> to vector<1x32x32xf32>
    %54 = vector.broadcast %53 : vector<1x32x32xf32> to vector<2x32x32xf32>
    %55 = arith.mulf %52, %54 : vector<2x32x32xf32>
    %cst_34 = arith.constant dense<0.000000e+00> : vector<2x8x32xf32>
    %56 = tpu.matmul %42, %55, %cst_34 {dimension_numbers = #tpu.dot_dimension_numbers<[2], [1], [1], [2], [0, 0, 0, 1, 1, 2], [0], [0]>} : vector<2x8x32xf32>, vector<2x32x32xf32>, vector<2x8x32xf32> -> vector<2x8x32xf32>
    %57 = arith.mulf %56, %51 : vector<2x8x32xf32>
    %58 = arith.addf %57, %42 : vector<2x8x32xf32>
    %c0_35 = arith.constant 0 : index
    %c0_36 = arith.constant 0 : index
    %59 = vector.load %arg11[%c0_35, %c0_36] : memref<32x32xf32, #tpu.memory_space<vmem>>, vector<32x32xf32>
    %cst_37 = arith.constant dense<0.000000e+00> : vector<2x8x32xf32>
    %60 = tpu.matmul %58, %59, %cst_37 {dimension_numbers = #tpu.dot_dimension_numbers<[2], [0], [0, 1], [1], [0, 0, 0, 1, 1, 1], [], []>} : vector<2x8x32xf32>, vector<32x32xf32>, vector<2x8x32xf32> -> vector<2x8x32xf32>
    %c0_38 = arith.constant 0 : index
    %c0_39 = arith.constant 0 : index
    %61 = vector.load %arg12[%c0_38, %c0_39] : memref<1x32xf32, #tpu.memory_space<vmem>>, vector<1x32xf32>
    %62 = vector.shape_cast %61 : vector<1x32xf32> to vector<1x1x32xf32>
    %63 = vector.broadcast %62 : vector<1x1x32xf32> to vector<2x8x32xf32>
    %64 = arith.addf %60, %63 : vector<2x8x32xf32>
    %c0_40 = arith.constant 0 : index
    %c0_41 = arith.constant 0 : index
    %c0_42 = arith.constant 0 : index
    %65 = vector.load %arg13[%c0_40, %c0_41, %c0_42] : memref<2x8x32xf32, #tpu.memory_space<vmem>>, vector<2x8x32xf32>
    tpu.vector_store %arg13[%c0_40, %c0_41, %c0_42], %64 {strides = array<i32>} : memref<2x8x32xf32, #tpu.memory_space<vmem>>, vector<2x8x32xf32>,
    return
  }
  func.func @transform_0(%arg0: i32) -> (i32, i32, i32) {
    %c0_i32 = arith.constant 0 : i32
    %c0_i32_0 = arith.constant 0 : i32
    %c0_i32_1 = arith.constant 0 : i32
    return %arg0, %c0_i32, %c0_i32_0 : i32, i32, i32
  }
  func.func @transform_1(%arg0: i32) -> (i32, i32) {
    %c0_i32 = arith.constant 0 : i32
    %c0_i32_0 = arith.constant 0 : i32
    %c0_i32_1 = arith.constant 0 : i32
    return %c0_i32, %c0_i32_0 : i32, i32
  }
  func.func @transform_2(%arg0: i32) -> (i32, i32) {
    %c0_i32 = arith.constant 0 : i32
    %c0_i32_0 = arith.constant 0 : i32
    %c0_i32_1 = arith.constant 0 : i32
    return %c0_i32, %c0_i32_0 : i32, i32
  }
  func.func @transform_3(%arg0: i32) -> (i32, i32) {
    %c0_i32 = arith.constant 0 : i32
    %c0_i32_0 = arith.constant 0 : i32
    %c0_i32_1 = arith.constant 0 : i32
    return %c0_i32, %c0_i32_0 : i32, i32
  }
  func.func @transform_4(%arg0: i32) -> (i32, i32) {
    %c0_i32 = arith.constant 0 : i32
    %c0_i32_0 = arith.constant 0 : i32
    %c0_i32_1 = arith.constant 0 : i32
    return %c0_i32, %c0_i32_0 : i32, i32
  }
  func.func @transform_5(%arg0: i32) -> (i32, i32) {
    %c0_i32 = arith.constant 0 : i32
    %c0_i32_0 = arith.constant 0 : i32
    %c0_i32_1 = arith.constant 0 : i32
    return %c0_i32, %c0_i32_0 : i32, i32
  }
  func.func @transform_6(%arg0: i32) -> (i32, i32) {
    %c0_i32 = arith.constant 0 : i32
    %c0_i32_0 = arith.constant 0 : i32
    %c0_i32_1 = arith.constant 0 : i32
    return %c0_i32, %c0_i32_0 : i32, i32
  }
  func.func @transform_7(%arg0: i32) -> (i32, i32) {
    %c0_i32 = arith.constant 0 : i32
    %c0_i32_0 = arith.constant 0 : i32
    %c0_i32_1 = arith.constant 0 : i32
    return %c0_i32, %c0_i32_0 : i32, i32
  }
  func.func @transform_8(%arg0: i32) -> (i32, i32) {
    %c0_i32 = arith.constant 0 : i32
    %c0_i32_0 = arith.constant 0 : i32
    %c0_i32_1 = arith.constant 0 : i32
    return %c0_i32, %c0_i32_0 : i32, i32
  }
  func.func @transform_9(%arg0: i32) -> (i32, i32) {
    %c0_i32 = arith.constant 0 : i32
    %c0_i32_0 = arith.constant 0 : i32
    %c0_i32_1 = arith.constant 0 : i32
    return %c0_i32, %c0_i32_0 : i32, i32
  }
  func.func @transform_10(%arg0: i32) -> (i32, i32) {
    %c0_i32 = arith.constant 0 : i32
    %c0_i32_0 = arith.constant 0 : i32
    %c0_i32_1 = arith.constant 0 : i32
    return %c0_i32, %c0_i32_0 : i32, i32
  }
  func.func @transform_11(%arg0: i32) -> (i32, i32) {
    %c0_i32 = arith.constant 0 : i32
    %c0_i32_0 = arith.constant 0 : i32
    %c0_i32_1 = arith.constant 0 : i32
    return %c0_i32, %c0_i32_0 : i32, i32
  }
  func.func @transform_12(%arg0: i32) -> (i32, i32, i32) {
    %c0_i32 = arith.constant 0 : i32
    %c0_i32_0 = arith.constant 0 : i32
    %c0_i32_1 = arith.constant 0 : i32
    return %arg0, %c0_i32, %c0_i32_0 : i32, i32, i32
  }
}

module attributes {stable_mosaic.version = 11 : i64} {
  func.func @_linear_attention_kernel(%arg0: i32, %arg1: memref<2x8x32xf32, #tpu.memory_space<vmem>>, %arg2: memref<32x4xf32, #tpu.memory_space<vmem>>, %arg3: memref<4x32xf32, #tpu.memory_space<vmem>>, %arg4: memref<32x32xf32, #tpu.memory_space<vmem>>, %arg5: memref<32x32xf32, #tpu.memory_space<vmem>>, %arg6: memref<1x32xf32, #tpu.memory_space<vmem>>, %arg7: memref<32x32xf32, #tpu.memory_space<vmem>>, %arg8: memref<1x32xf32, #tpu.memory_space<vmem>>, %arg9: memref<32x32xf32, #tpu.memory_space<vmem>>, %arg10: memref<1x32xf32, #tpu.memory_space<vmem>>, %arg11: memref<32x32xf32, #tpu.memory_space<vmem>>, %arg12: memref<1x32xf32, #tpu.memory_space<vmem>>, %arg13: memref<2x8x32xf32, #tpu.memory_space<vmem>>) attributes {dimension_semantics = [#tpu.dimension_semantics<parallel>], iteration_bounds = array<i64: 1>, scalar_prefetch = 0 : i64, scratch_operands = 0 : i64, tpu.core_type = #tpu.core_type<tc>, window_params = [{transform_indices = @transform_0, window_bounds = array<i64: 2, 8, 32>}, {pipeline_mode = #tpu.pipeline_mode<synchronous>, transform_indices = @transform_1, window_bounds = array<i64: 32, 4>}, {pipeline_mode = #tpu.pipeline_mode<synchronous>, transform_indices = @transform_2, window_bounds = array<i64: 4, 32>}, {pipeline_mode = #tpu.pipeline_mode<synchronous>, transform_indices = @transform_3, window_bounds = array<i64: 32, 32>}, {pipeline_mode = #tpu.pipeline_mode<synchronous>, transform_indices = @transform_4, window_bounds = array<i64: 32, 32>}, {pipeline_mode = #tpu.pipeline_mode<synchronous>, transform_indices = @transform_5, window_bounds = array<i64: 1, 32>}, {pipeline_mode = #tpu.pipeline_mode<synchronous>, transform_indices = @transform_6, window_bounds = array<i64: 32, 32>}, {pipeline_mode = #tpu.pipeline_mode<synchronous>, transform_indices = @transform_7, window_bounds = array<i64: 1, 32>}, {pipeline_mode = #tpu.pipeline_mode<synchronous>, transform_indices = @transform_8, window_bounds = array<i64: 32, 32>}, {pipeline_mode = #tpu.pipeline_mode<synchronous>, transform_indices = @transform_9, window_bounds = array<i64: 1, 32>}, {pipeline_mode = #tpu.pipeline_mode<synchronous>, transform_indices = @transform_10, window_bounds = array<i64: 32, 32>}, {pipeline_mode = #tpu.pipeline_mode<synchronous>, transform_indices = @transform_11, window_bounds = array<i64: 1, 32>}, {transform_indices = @transform_12, window_bounds = array<i64: 2, 8, 32>}]} {
    %c0 = arith.constant 0 : index
    %c0_0 = arith.constant 0 : index
    %0 = vector.load %arg2[%c0, %c0_0] : memref<32x4xf32, #tpu.memory_space<vmem>>, vector<32x4xf32>
    %c0_1 = arith.constant 0 : index
    %c0_2 = arith.constant 0 : index
    %1 = vector.load %arg3[%c0_1, %c0_2] : memref<4x32xf32, #tpu.memory_space<vmem>>, vector<4x32xf32>
    %c0_3 = arith.constant 0 : index
    %c0_4 = arith.constant 0 : index
    %2 = vector.load %arg4[%c0_3, %c0_4] : memref<32x32xf32, #tpu.memory_space<vmem>>, vector<32x32xf32>
    %c0_5 = arith.constant 0 : index
    %c0_6 = arith.constant 0 : index
    %c0_7 = arith.constant 0 : index
    %3 = vector.load %arg1[%c0_5, %c0_6, %c0_7] : memref<2x8x32xf32, #tpu.memory_space<vmem>>, vector<2x8x32xf32>
    %4 = vector.shape_cast %3 : vector<2x8x32xf32> to vector<16x32xf32>
    %c0_8 = arith.constant 0 : index
    %c0_9 = arith.constant 0 : index
    %5 = vector.load %arg5[%c0_8, %c0_9] : memref<32x32xf32, #tpu.memory_space<vmem>>, vector<32x32xf32>
    %cst = arith.constant dense<0.000000e+00> : vector<16x32xf32>
    %6 = tpu.matmul %4, %5, %cst {dimension_numbers = #tpu.dot_dimension_numbers<[1], [0], [0], [1], [0, 0, 1, 1], [], []>} : vector<16x32xf32>, vector<32x32xf32>, vector<16x32xf32> -> vector<16x32xf32>
    %c0_10 = arith.constant 0 : index
    %c0_11 = arith.constant 0 : index
    %7 = vector.load %arg6[%c0_10, %c0_11] : memref<1x32xf32, #tpu.memory_space<vmem>>, vector<1x32xf32>
    %8 = vector.broadcast %7 : vector<1x32xf32> to vector<16x32xf32>
    %9 = arith.addf %6, %8 : vector<16x32xf32>
    %c0_12 = arith.constant 0 : index
    %c0_13 = arith.constant 0 : index
    %10 = vector.load %arg7[%c0_12, %c0_13] : memref<32x32xf32, #tpu.memory_space<vmem>>, vector<32x32xf32>
    %cst_14 = arith.constant dense<0.000000e+00> : vector<16x32xf32>
    %11 = tpu.matmul %4, %10, %cst_14 {dimension_numbers = #tpu.dot_dimension_numbers<[1], [0], [0], [1], [0, 0, 1, 1], [], []>} : vector<16x32xf32>, vector<32x32xf32>, vector<16x32xf32> -> vector<16x32xf32>
    %c0_15 = arith.constant 0 : index
    %c0_16 = arith.constant 0 : index
    %12 = vector.load %arg8[%c0_15, %c0_16] : memref<1x32xf32, #tpu.memory_space<vmem>>, vector<1x32xf32>
    %13 = vector.broadcast %12 : vector<1x32xf32> to vector<16x32xf32>
    %14 = arith.addf %11, %13 : vector<16x32xf32>
    %c0_17 = arith.constant 0 : index
    %c0_18 = arith.constant 0 : index
    %15 = vector.load %arg9[%c0_17, %c0_18] : memref<32x32xf32, #tpu.memory_space<vmem>>, vector<32x32xf32>
    %cst_19 = arith.constant dense<0.000000e+00> : vector<16x32xf32>
    %16 = tpu.matmul %4, %15, %cst_19 {dimension_numbers = #tpu.dot_dimension_numbers<[1], [0], [0], [1], [0, 0, 1, 1], [], []>} : vector<16x32xf32>, vector<32x32xf32>, vector<16x32xf32> -> vector<16x32xf32>
    %c0_20 = arith.constant 0 : index
    %c0_21 = arith.constant 0 : index
    %17 = vector.load %arg10[%c0_20, %c0_21] : memref<1x32xf32, #tpu.memory_space<vmem>>, vector<1x32xf32>
    %18 = vector.broadcast %17 : vector<1x32xf32> to vector<16x32xf32>
    %19 = arith.addf %16, %18 : vector<16x32xf32>
    %cst_22 = arith.constant dense<0xFF800000> : vector<16xf32>
    %20 = vector.multi_reduction <maximumf>, %9, %cst_22 [1] : vector<16x32xf32> to vector<16xf32>
    %21 = vector.shape_cast %20 : vector<16xf32> to vector<16x1xf32>
    %22 = vector.broadcast %21 : vector<16x1xf32> to vector<16x32xf32>
    %23 = arith.subf %9, %22 : vector<16x32xf32>
    %24 = math.exp %23 : vector<16x32xf32>
    %cst_23 = arith.constant dense<0.000000e+00> : vector<16x4xf32>
    %25 = tpu.matmul %24, %0, %cst_23 {dimension_numbers = #tpu.dot_dimension_numbers<[1], [0], [0], [1], [0, 0, 1, 1], [], []>} : vector<16x32xf32>, vector<32x4xf32>, vector<16x4xf32> -> vector<16x4xf32>
    %cst_24 = arith.constant 1.000000e-30 : f32
    %26 = vector.broadcast %cst_24 : f32 to vector<16x4xf32>
    %27 = arith.maximumf %25, %26 : vector<16x4xf32>
    %28 = tpu.reciprocal %27 : vector<16x4xf32> -> vector<16x4xf32>
    %cst_25 = arith.constant dense<0.000000e+00> : vector<16x32xf32>
    %29 = tpu.matmul %28, %1, %cst_25 {dimension_numbers = #tpu.dot_dimension_numbers<[1], [0], [0], [1], [0, 0, 1, 1], [], []>} : vector<16x4xf32>, vector<4x32xf32>, vector<16x32xf32> -> vector<16x32xf32>
    %30 = arith.mulf %24, %29 : vector<16x32xf32>
    %cst_26 = arith.constant dense<0xFF800000> : vector<16xf32>
    %31 = vector.multi_reduction <maximumf>, %14, %cst_26 [1] : vector<16x32xf32> to vector<16xf32>
    %32 = vector.shape_cast %31 : vector<16xf32> to vector<16x1xf32>
    %33 = vector.broadcast %32 : vector<16x1xf32> to vector<16x32xf32>
    %34 = arith.subf %14, %33 : vector<16x32xf32>
    %35 = math.exp %34 : vector<16x32xf32>
    %cst_27 = arith.constant dense<0.000000e+00> : vector<16x4xf32>
    %36 = tpu.matmul %35, %0, %cst_27 {dimension_numbers = #tpu.dot_dimension_numbers<[1], [0], [0], [1], [0, 0, 1, 1], [], []>} : vector<16x32xf32>, vector<32x4xf32>, vector<16x4xf32> -> vector<16x4xf32>
    %cst_28 = arith.constant 1.000000e-30 : f32
    %37 = vector.broadcast %cst_28 : f32 to vector<16x4xf32>
    %38 = arith.maximumf %36, %37 : vector<16x4xf32>
    %39 = tpu.reciprocal %38 : vector<16x4xf32> -> vector<16x4xf32>
    %cst_29 = arith.constant dense<0.000000e+00> : vector<16x32xf32>
    %40 = tpu.matmul %39, %1, %cst_29 {dimension_numbers = #tpu.dot_dimension_numbers<[1], [0], [0], [1], [0, 0, 1, 1], [], []>} : vector<16x4xf32>, vector<4x32xf32>, vector<16x32xf32> -> vector<16x32xf32>
    %41 = arith.mulf %35, %40 : vector<16x32xf32>
    %42 = vector.shape_cast %30 : vector<16x32xf32> to vector<2x8x32xf32>
    %43 = vector.shape_cast %41 : vector<16x32xf32> to vector<2x8x32xf32>
    %44 = vector.shape_cast %19 : vector<16x32xf32> to vector<2x8x32xf32>
    %cst_30 = arith.constant dense<0.000000e+00> : vector<2x32xf32>
    %45 = vector.multi_reduction <add>, %43, %cst_30 [1] : vector<2x8x32xf32> to vector<2x32xf32>
    %46 = vector.shape_cast %45 : vector<2x32xf32> to vector<2x1x32xf32>
    %47 = vector.broadcast %46 : vector<2x1x32xf32> to vector<2x8x32xf32>
    %48 = arith.mulf %42, %47 : vector<2x8x32xf32>
    %cst_31 = arith.constant dense<0.000000e+00> : vector<2x8x4xf32>
    %49 = tpu.matmul %48, %0, %cst_31 {dimension_numbers = #tpu.dot_dimension_numbers<[2], [0], [0, 1], [1], [0, 0, 0, 1, 1, 1], [], []>} : vector<2x8x32xf32>, vector<32x4xf32>, vector<2x8x4xf32> -> vector<2x8x4xf32>
    %50 = tpu.reciprocal %49 : vector<2x8x4xf32> -> vector<2x8x4xf32>
    %cst_32 = arith.constant dense<0.000000e+00> : vector<2x8x32xf32>
    %51 = tpu.matmul %50, %1, %cst_32 {dimension_numbers = #tpu.dot_dimension_numbers<[2], [0], [0, 1], [1], [0, 0, 0, 1, 1, 1], [], []>} : vector<2x8x4xf32>, vector<4x32xf32>, vector<2x8x32xf32> -> vector<2x8x32xf32>
    %cst_33 = arith.constant dense<0.000000e+00> : vector<2x32x32xf32>
    %52 = tpu.matmul %43, %44, %cst_33 {dimension_numbers = #tpu.dot_dimension_numbers<[1], [1], [2], [2], [0, 0, 0, 2, 1, 2], [0], [0]>} : vector<2x8x32xf32>, vector<2x8x32xf32>, vector<2x32x32xf32> -> vector<2x32x32xf32>
    %53 = vector.shape_cast %2 : vector<32x32xf32> to vector<1x32x32xf32>
    %54 = vector.broadcast %53 : vector<1x32x32xf32> to vector<2x32x32xf32>
    %55 = arith.mulf %52, %54 : vector<2x32x32xf32>
    %cst_34 = arith.constant dense<0.000000e+00> : vector<2x8x32xf32>
    %56 = tpu.matmul %42, %55, %cst_34 {dimension_numbers = #tpu.dot_dimension_numbers<[2], [1], [1], [2], [0, 0, 0, 1, 1, 2], [0], [0]>} : vector<2x8x32xf32>, vector<2x32x32xf32>, vector<2x8x32xf32> -> vector<2x8x32xf32>
    %57 = arith.mulf %56, %51 : vector<2x8x32xf32>
    %58 = arith.addf %57, %42 : vector<2x8x32xf32>
    %c0_35 = arith.constant 0 : index
    %c0_36 = arith.constant 0 : index
    %59 = vector.load %arg11[%c0_35, %c0_36] : memref<32x32xf32, #tpu.memory_space<vmem>>, vector<32x32xf32>
    %cst_37 = arith.constant dense<0.000000e+00> : vector<2x8x32xf32>
    %60 = tpu.matmul %58, %59, %cst_37 {dimension_numbers = #tpu.dot_dimension_numbers<[2], [0], [0, 1], [1], [0, 0, 0, 1, 1, 1], [], []>} : vector<2x8x32xf32>, vector<32x32xf32>, vector<2x8x32xf32> -> vector<2x8x32xf32>
    %c0_38 = arith.constant 0 : index
    %c0_39 = arith.constant 0 : index
    %61 = vector.load %arg12[%c0_38, %c0_39] : memref<1x32xf32, #tpu.memory_space<vmem>>, vector<1x32xf32>
    %62 = vector.shape_cast %61 : vector<1x32xf32> to vector<1x1x32xf32>
    %63 = vector.broadcast %62 : vector<1x1x32xf32> to vector<2x8x32xf32>
    %64 = arith.addf %60, %63 : vector<2x8x32xf32>
    %c0_40 = arith.constant 0 : index
    %c0_41 = arith.constant 0 : index
    %c0_42 = arith.constant 0 : index
    %65 = vector.load %arg13[%c0_40, %c0_41, %c0_42] : memref<2x8x32xf32, #tpu.memory_space<vmem>>, vector<2x8x32xf32>
    tpu.vector_store %arg13[%c0_40, %c0_41, %c0_42], %64 {strides = array<i32>} : memref<2x8x32xf32, #tpu.memory_space<vmem>>, vector<2x8x32xf32>,
    return
  }
  func.func @transform_0(%arg0: i32) -> (i32, i32, i32) {
    %c0_i32 = arith.constant 0 : i32
    %c0_i32_0 = arith.constant 0 : i32
    %c0_i32_1 = arith.constant 0 : i32
    return %arg0, %c0_i32, %c0_i32_0 : i32, i32, i32
  }
  func.func @transform_1(%arg0: i32) -> (i32, i32) {
    %c0_i32 = arith.constant 0 : i32
    %c0_i32_0 = arith.constant 0 : i32
    %c0_i32_1 = arith.constant 0 : i32
    return %c0_i32, %c0_i32_0 : i32, i32
  }
  func.func @transform_2(%arg0: i32) -> (i32, i32) {
    %c0_i32 = arith.constant 0 : i32
    %c0_i32_0 = arith.constant 0 : i32
    %c0_i32_1 = arith.constant 0 : i32
    return %c0_i32, %c0_i32_0 : i32, i32
  }
  func.func @transform_3(%arg0: i32) -> (i32, i32) {
    %c0_i32 = arith.constant 0 : i32
    %c0_i32_0 = arith.constant 0 : i32
    %c0_i32_1 = arith.constant 0 : i32
    return %c0_i32, %c0_i32_0 : i32, i32
  }
  func.func @transform_4(%arg0: i32) -> (i32, i32) {
    %c0_i32 = arith.constant 0 : i32
    %c0_i32_0 = arith.constant 0 : i32
    %c0_i32_1 = arith.constant 0 : i32
    return %c0_i32, %c0_i32_0 : i32, i32
  }
  func.func @transform_5(%arg0: i32) -> (i32, i32) {
    %c0_i32 = arith.constant 0 : i32
    %c0_i32_0 = arith.constant 0 : i32
    %c0_i32_1 = arith.constant 0 : i32
    return %c0_i32, %c0_i32_0 : i32, i32
  }
  func.func @transform_6(%arg0: i32) -> (i32, i32) {
    %c0_i32 = arith.constant 0 : i32
    %c0_i32_0 = arith.constant 0 : i32
    %c0_i32_1 = arith.constant 0 : i32
    return %c0_i32, %c0_i32_0 : i32, i32
  }
  func.func @transform_7(%arg0: i32) -> (i32, i32) {
    %c0_i32 = arith.constant 0 : i32
    %c0_i32_0 = arith.constant 0 : i32
    %c0_i32_1 = arith.constant 0 : i32
    return %c0_i32, %c0_i32_0 : i32, i32
  }
  func.func @transform_8(%arg0: i32) -> (i32, i32) {
    %c0_i32 = arith.constant 0 : i32
    %c0_i32_0 = arith.constant 0 : i32
    %c0_i32_1 = arith.constant 0 : i32
    return %c0_i32, %c0_i32_0 : i32, i32
  }
  func.func @transform_9(%arg0: i32) -> (i32, i32) {
    %c0_i32 = arith.constant 0 : i32
    %c0_i32_0 = arith.constant 0 : i32
    %c0_i32_1 = arith.constant 0 : i32
    return %c0_i32, %c0_i32_0 : i32, i32
  }
  func.func @transform_10(%arg0: i32) -> (i32, i32) {
    %c0_i32 = arith.constant 0 : i32
    %c0_i32_0 = arith.constant 0 : i32
    %c0_i32_1 = arith.constant 0 : i32
    return %c0_i32, %c0_i32_0 : i32, i32
  }
  func.func @transform_11(%arg0: i32) -> (i32, i32) {
    %c0_i32 = arith.constant 0 : i32
    %c0_i32_0 = arith.constant 0 : i32
    %c0_i32_1 = arith.constant 0 : i32
    return %c0_i32, %c0_i32_0 : i32, i32
  }
  func.func @transform_12(%arg0: i32) -> (i32, i32, i32) {
    %c0_i32 = arith.constant 0 : i32
    %c0_i32_0 = arith.constant 0 : i32
    %c0_i32_1 = arith.constant 0 : i32
    return %arg0, %c0_i32, %c0_i32_0 : i32, i32, i32
  }
}

</mosaic_0001>

<bundles_post_ra>
// kernel: tpu_custom_call.1
= control target key start
LH: loop header
LB: loop body
LE: loop exit
PB: predicated region body
PF: predicated region fallthrough
CT: control target
= control target key end

     0   :  { %17 = vsyncpa [#allocation3], 0  ;;  %s2116_s0 = inlined_call_operand.hbm [shape: f32[2,8,32], index: 0, kind: input, shape index: {}]   ;;  %s2117_s1 = inlined_call_operand.vmem [shape: f32[32,4], index: 1, kind: input, shape index: {}]   ;;  %s2118_s2 = inlined_call_operand.vmem [shape: f32[4,32], index: 2, kind: input, shape index: {}]   ;;  %s2119_s3 = inlined_call_operand.vmem [shape: f32[32,32], index: 3, kind: input, shape index: {}]   ;;  %s2120_s4 = inlined_call_operand.hbm [shape: f32[32,32], index: 4, kind: input, shape index: {}]   ;;  %s2121_s5 = inlined_call_operand.vmem [shape: f32[1,32], index: 5, kind: input, shape index: {}]   ;;  %s2122_s6 = inlined_call_operand.hbm [shape: f32[32,32], index: 6, kind: input, shape index: {}]   ;;  %s2123_s7 = inlined_call_operand.vmem [shape: f32[1,32], index: 7, kind: input, shape index: {}]   ;;  %s2124_s8 = inlined_call_operand.hbm [shape: f32[32,32], index: 8, kind: input, shape index: {}]   ;;  %s2125_s9 = inlined_call_operand.vmem [shape: f32[1,32], index: 9, kind: input, shape index: {}]   ;;  %s2126_s10 = inlined_call_operand.hbm [shape: f32[32,32], index: 10, kind: input, shape index: {}]   ;;  %s2127_s11 = inlined_call_operand.vmem [shape: f32[1,32], index: 11, kind: input, shape index: {}]   ;;  %s2128_s12 = inlined_call_operand.hbm [shape: f32[2,8,32], index: 12, kind: output, shape index: {}]  }
   0x1   :  { %18 = vsyncpa [#allocation6], 0 }
   0x2   :  { %19 = vsyncpa [#allocation9], 0 }
   0x3   :  { %20 = vsyncpa [#allocation4], 0  ;;  %s1857_s21 = smov [#allocation5]   ;;  %s1858_s23 = smov [#allocation8]  }
   0x4   :  { %s44_s22 = sshll.u32 %s1857_s21, 4  ;;  %s72_s24 = sshll.u32 %s1858_s23, 4  ;;  %s45_s22 = int_to_ptr.vmem [resolvable:$true] %s44_s22  ;;  %s73_s24 = int_to_ptr.vmem [resolvable:$true] %s72_s24 }
   0x5   :  { %s1737_s25 = scalar_lea.vmem %s45_s22, 512  ;;  %p1742_p1 = scmp.lt.s32.totalorder %s45_s22, %s45_s22 }
   0x6   :  { %p1738_p0 = scmp.ne.s32.totalorder %s45_s22, %s1737_s25  ;;  %p1743_p2 = scmp.lt.s32.totalorder %s1737_s25, %s1737_s25 }
   0x8   :  { %p1744_p3 = por %p1743_p2, %p1742_p1 }
   0xa   :  { %p1745_p4 = pnand %p1744_p3, %p1738_p0 }
   0xc   :  { %1748 = shalt.err (!%p1745_p4)
}
   0xd   :  { %s1859_s26 = smov 128   ;;  %s1860_s27 = smov 8  }
   0xe   :  { %50 = dma.hbm_to_vmem [thread:$0]  %s2120_s4, 512, %s45_s22, [#allocation6], %s1859_s26, %s1859_s26, %s1860_s27  }
   0xf   :  { %s1757_s30 = scalar_lea.vmem %s73_s24, 512  ;;  %p1762_p6 = scmp.lt.s32.totalorder %s73_s24, %s73_s24 }
  0x10   :  { %p1758_p5 = scmp.ne.s32.totalorder %s73_s24, %s1757_s30  ;;  %p1763_p7 = scmp.lt.s32.totalorder %s1757_s30, %s1757_s30 }
  0x12   :  { %p1764_p8 = por %p1763_p7, %p1762_p6 }
  0x14   :  { %p1765_p9 = pnand %p1764_p8, %p1758_p5 }
  0x16   :  { %1768 = shalt.err (!%p1765_p9)
}
  0x17   :  { %78 = dma.hbm_to_vmem [thread:$0]  %s2124_s8, 512, %s73_s24, [#allocation9], %s1859_s26, %s1859_s26, %s1860_s27  }
  0x18   :  { %s1861_s15 = smov [#allocation2]   ;;  %s1862_s17 = smov [#allocation7]  }
  0x19   :  { %s26_s16 = sshll.u32 %s1861_s15, 4  ;;  %s58_s18 = sshll.u32 %s1862_s17, 4  ;;  %s27_s16 = int_to_ptr.vmem [resolvable:$true] %s26_s16  ;;  %s59_s18 = int_to_ptr.vmem [resolvable:$true] %s58_s18 }
  0x1a   :  { %s1777_s4 = scalar_lea.vmem %s27_s16, 256  ;;  %p1782_p11 = scmp.lt.s32.totalorder %s27_s16, %s27_s16 }
  0x1b   :  { %p1778_p10 = scmp.ne.s32.totalorder %s27_s16, %s1777_s4  ;;  %p1783_p12 = scmp.lt.s32.totalorder %s1777_s4, %s1777_s4 }
  0x1d   :  { %p1784_p13 = por %p1783_p12, %p1782_p11 }
  0x1f   :  { %p1785_p0 = pnand %p1784_p13, %p1778_p10 }
  0x21   :  { %1788 = shalt.err (!%p1785_p0)
}
  0x22   :  { %32 = dma.hbm_to_vmem [thread:$0]  %s2116_s0, 256, %s27_s16, [#allocation3], %s1859_s26, %s1859_s26, %s1860_s27  }
  0x23   :  { %s1797_s8 = scalar_lea.vmem %s59_s18, 512  ;;  %p1802_p2 = scmp.lt.s32.totalorder %s59_s18, %s59_s18 }
  0x24   :  { %p1798_p1 = scmp.ne.s32.totalorder %s59_s18, %s1797_s8  ;;  %p1803_p3 = scmp.lt.s32.totalorder %s1797_s8, %s1797_s8 }
  0x26   :  { %p1804_p4 = por %p1803_p3, %p1802_p2 }
  0x28   :  { %p1805_p5 = pnand %p1804_p4, %p1798_p1 }
  0x2a   :  { %1808 = shalt.err (!%p1805_p5)
}
  0x2b   :  { %64 = dma.hbm_to_vmem [thread:$0]  %s2122_s6, 512, %s59_s18, [#allocation6], %s1859_s26, %s1859_s26, %s1860_s27  }
  0x2c   :  { %s1863_s23 = smov [#allocation10]  }
  0x2d   :  { %s86_s24 = sshll.u32 %s1863_s23, 4  ;;  %s87_s24 = int_to_ptr.vmem [resolvable:$true] %s86_s24 }
  0x2e   :  { %s1817_s25 = scalar_lea.vmem %s87_s24, 512  ;;  %p1822_p7 = scmp.lt.s32.totalorder %s87_s24, %s87_s24 }
  0x2f   :  { %p1818_p6 = scmp.ne.s32.totalorder %s87_s24, %s1817_s25  ;;  %p1823_p8 = scmp.lt.s32.totalorder %s1817_s25, %s1817_s25 }
  0x31   :  { %p1824_p9 = por %p1823_p8, %p1822_p7 }
  0x33   :  { %p1825_p10 = pnand %p1824_p9, %p1818_p6 }
  0x35   :  { %1828 = shalt.err (!%p1825_p10)
}
  0x36   :  { %92 = dma.hbm_to_vmem [thread:$0]  %s2126_s10, 512, %s87_s24, [#allocation9], %s1859_s26, %s1859_s26, %s1860_s27  }
  0x37   :  { %1849 = dma.done.wait [#allocation3], 256  }
  0x38   :  { %1850 = vsyncadd [#allocation3], 4294967040 }
  0x39   :  { %1851 = dma.done.wait [#allocation6], 1024  }
  0x3a   :  { %1852 = vsyncadd [#allocation6], 4294966272 }
  0x3b   :  { %1853 = dma.done.wait [#allocation9], 1024  }
  0x3c   :  { %1854 = vsyncadd [#allocation9], 4294966272  ;;  %v124_v0 = vld [vmem:[#allocation5 + $0x18] sm:$0xff]  ;;  %v123_v2 = vld [vmem:[#allocation5 + $0x10] sm:$0xff]  ;;  %vm132_vm0 = vcmask 261120   ;;  %vm490_vm1 = vcmask 1043456  }
  0x3d   :  { %v217_v1 = vld [vmem:[#allocation7 + $0x18] sm:$0xff]  ;;  %1569 = vmatprep.subr.mxu0 %v124_v0  ;;  %v216_v3 = vld [vmem:[#allocation7 + $0x10] sm:$0xff]  ;;  %v122_v4 = vld [vmem:[#allocation5 + $0x8] sm:$0xff]  ;;  %vm483_vm2 = vcmask 31744   ;;  %vm963_vm3 = vcmask 64512   ;;  %vm1865_vm4 = vmmov 0  }
  0x3e   :  { %1580 = vmatprep.subr.mxu1 %v217_v1  ;;  %1570 = vmatpush3.msra.mxu0 %v124_v0  ;;  %v215_v5 = vld [vmem:[#allocation7 + $0x8] sm:$0xff]  ;;  %v121_v6 = vld [vmem:[#allocation5] sm:$0xff]  ;;  %v119_v8 = vld [vmem:[#allocation2] sm:$0xff]  ;;  %s1866_s28 = smov [#allocation11]  }
  0x3f   :  { %1581 = vmatpush3.msra.mxu1 %v217_v1  ;;  %1571 = vmatprep.subr.mxu0 %v123_v2  ;;  %v214_v7 = vld [vmem:[#allocation7] sm:$0xff]  ;;  %v1962_v9 = vld [vmem:[#allocation2 + $0x8] sm:$0xff]  ;;  %v1464_v12 = vld [vmem:[%s2123_s7] ss:$0 sm:$0xff]  ;;  %s1447_s6 = sshll.u32 %s1866_s28, 4  ;;  %s1448_s6 = int_to_ptr.vmem [resolvable:$true] %s1447_s6 }
  0x40   :  { %1582 = vmatprep.subr.mxu1 %v216_v3  ;;  %1572 = vmatpush3.msra.mxu0 %v123_v2  ;;  %v1461_v13 = vld [vmem:[%s2121_s5] ss:$0 sm:$0xff]  ;;  %v1984_v24 = vld [vmem:[%s2117_s1 + $0x18] sm:$0xff]  ;;  %v1989_v25 = vld [vmem:[%s2117_s1 + $0x10] sm:$0xff]  ;;  %s1829_s10 = scalar_lea.vmem %s1448_s6, 256  ;;  %p1834_p12 = scmp.lt.s32.totalorder %s1448_s6, %s1448_s6 }
  0x41   :  { %1583 = vmatpush3.msra.mxu1 %v216_v3  ;;  %1573 = vmatprep.subr.mxu0 %v122_v4  ;;  %v1996_v26 = vld [vmem:[%s2117_s1 + $0x8] sm:$0xff]  ;;  %v2005_v27 = vld [vmem:[%s2117_s1] sm:$0xff]  ;;  %v301_v46 = vld [vmem:[#allocation8 + $0x8] sm:$0xff]  ;;  %p1830_p11 = scmp.ne.s32.totalorder %s1448_s6, %s1829_s10  ;;  %p1835_p13 = scmp.lt.s32.totalorder %s1829_s10, %s1829_s10 }
  0x42   :  { %1584 = vmatprep.subr.mxu1 %v215_v5  ;;  %1574 = vmatpush3.msra.mxu0 %v122_v4  ;;  %v303_v44 = vld [vmem:[#allocation8 + $0x18] sm:$0xff]  ;;  %v302_v45 = vld [vmem:[#allocation8 + $0x10] sm:$0xff]  ;;  %v300_v47 = vld [vmem:[#allocation8] sm:$0xff] }
  0x43   :  { %1585 = vmatpush3.msra.mxu1 %v215_v5  ;;  %1575 = vmatprep.subr.mxu0 %v121_v6  ;;  %v114_v48 = vld [vmem:[%s2118_s2] sm:$0xf]  ;;  %p1836_p0 = por %p1835_p13, %p1834_p12 }
  0x44   :  { %1586 = vmatprep.subr.mxu1 %v214_v7  ;;  %1576 = vmatpush3.msra.mxu0 %v121_v6  ;;  %v1467_v61 = vld [vmem:[%s2125_s9] ss:$0 sm:$0xff] }
  0x45   :  { %1577 = vmatprep.mubr.msk.f32.mxu0 %vm132_vm0, %v119_v8  ;;  %1587 = vmatpush3.msra.mxu1 %v214_v7  ;;  %p1837_p1 = pnand %p1836_p0, %p1830_p11 }
  0x46   :  { %1588 = vmatprep.mubr.msk.f32.mxu1 %vm132_vm0, %v119_v8  ;;  %1578 = vmatmul.mubr.msk.f32.vlgmr.msra.gmra.mxu0 %vm132_vm0, %v1962_v9 }
  0x47   :  { %1589 = vmatmul.mubr.msk.f32.vlgmr.msra.gmra.mxu1 %vm132_vm0, %v1962_v9  ;;  %1599 = vmatprep.mubr.msk.f32.mxu0 %vm132_vm0, %v119_v8 }
  0x48   :  { %1602 = vmatprep.subr.mxu1 %v1984_v24  ;;  %1591 = vmatprep.subr.mxu0 %v303_v44 }
  0x49   :  { %1603 = vmatpush3.msra.mxu1 %v1984_v24  ;;  %1592 = vmatpush3.msra.mxu0 %v303_v44  ;;  %v117_v44 = vld [vmem:[%s2119_s3 + $0x10] sm:$0xff] }
  0x4a   :  { %1604 = vmatprep.subr.mxu1 %v1989_v25  ;;  %1593 = vmatprep.subr.mxu0 %v302_v45 }
  0x4b   :  { %1605 = vmatpush3.msra.mxu1 %v1989_v25  ;;  %1594 = vmatpush3.msra.mxu0 %v302_v45 }
  0x4c   :  { %1606 = vmatprep.subr.mxu1 %v1996_v26  ;;  %1595 = vmatprep.subr.mxu0 %v301_v46 }
  0x4d   :  { %1607 = vmatpush3.msra.mxu1 %v1996_v26  ;;  %1596 = vmatpush3.msra.mxu0 %v301_v46  ;;  %v115_v46 = vld [vmem:[%s2119_s3] sm:$0xff] }
  0x4e   :  { %1608 = vmatprep.subr.mxu1 %v2005_v27  ;;  %1597 = vmatprep.subr.mxu0 %v300_v47 }
  0x4f   :  { %1609 = vmatpush3.msra.mxu1 %v2005_v27  ;;  %1598 = vmatpush3.msra.mxu0 %v300_v47 }
  0x50   :  { %1618 = vmatprep.subr.mxu1 %v1984_v24  ;;  %1600 = vmatmul.mubr.msk.f32.vlgmr.msra.gmra.mxu0 %vm132_vm0, %v1962_v9 }
  0x51   :  { %1613 = vmatprep.subr.msk.mxu0 %vm490_vm1, %v114_v48 }
  0x52   :  { %1614 = vmatpush3.msk.msra.mxu0 %vm490_vm1, %v114_v48 }
  0x53   :  { %1629 = vmatprep.subr.msk.mxu0 %vm490_vm1, %v114_v48 }
 0x106   :  { %v1579_v10 = vpop.f32.mrf.mxu0 }
 0x107   :  { %v1590_v11 = vpop.f32.mrf.mxu1  ;;  %v211_v19 = vadd.f32 %v1579_v10, %v1461_v13 }
 0x108   :  { %v205_v14 = vpop.f32.mrf.mxu0  ;;  %v297_v16 = vadd.f32 %v1590_v11, %v1464_v12 }
 0x109   :  { %v291_v15 = vpop.f32.mrf.mxu1  ;;  %v206_v17 = vadd.f32 %v1461_v13, %v205_v14  ;;  %v389_v23 = vsel %vm132_vm0, %v211_v19, -inf }
 0x10a   :  { %v292_v18 = vadd.f32 %v1464_v12, %v291_v15  ;;  %v574_v22 = vsel %vm132_vm0, %v297_v16, -inf }
 0x10b   :  { %v386_v21 = vsel %vm132_vm0, %v206_v17, -inf }
 0x10c   :  { %v571_v20 = vsel %vm132_vm0, %v292_v18, -inf  ;;  %387 = vmax.xlane.f32.xlu0 %v386_v21 }
 0x10d   :  { %572 = vmax.xlane.f32.xlu1 %v571_v20 }
 0x110   :  { %390 = vmax.xlane.f32.xlu0 %v389_v23  ;;  %v1601_v62 = vpop.f32.mrf.mxu0 }
 0x111   :  { %575 = vmax.xlane.f32.xlu1 %v574_v22  ;;  %v383_v63 = vadd.f32 %v1601_v62, %v1467_v61  ;;  %v1350_v62 = vld [vmem:[#allocation10 + $0x10] sm:$0xff] }
 0x112   :  { %v377_v0 = vpop.f32.mrf.mxu0 }
 0x113   :  { %v378_v1 = vadd.f32 %v1467_v61, %v377_v0  ;;  %v1351_v61 = vld [vmem:[#allocation10 + $0x18] sm:$0xff]  ;;  %v1348_v0 = vld [vmem:[#allocation10] sm:$0xff] }
 0x195   :  { %v388_v29 = vpop.xlane.xlu0 %387 }
 0x196   :  { %v573_v28 = vpop.xlane.xlu1 %572  ;;  %v392_v30 = vsub.f32 %v206_v17, %v388_v29 }
 0x197   :  { %v577_v31 = vsub.f32 %v292_v18, %v573_v28 }
 0x198   :  { %v394_v32 = vmul.f32 1.442695, %v392_v30  ;;  %v1864_v30 = vmov 0.0  }
 0x199   :  { %v391_v33 = vpop.xlane.xlu0 %390  ;;  %v579_v35 = vmul.f32 1.442695, %v577_v31 }
 0x19a   :  { %v393_v34 = vsub.f32 %v211_v19, %v391_v33  ;;  %1709 = vpow2.f32 %v394_v32  ;;  %v576_v36 = vpop.xlane.xlu1 %575 }
 0x19b   :  { %v578_v38 = vsub.f32 %v297_v16, %v576_v36 }
 0x19c   :  { %v396_v37 = vmul.f32 1.442695, %v393_v34 }
 0x19d   :  { %v581_v39 = vmul.f32 1.442695, %v578_v38 }
 0x19e   :  { %1711 = vpow2.f32 %v396_v37 }
 0x19f   :  { %1713 = vpow2.f32 %v579_v35 }
 0x1a0   :  { %1715 = vpow2.f32 %v581_v39 }
 0x1a7   :  { %v2010_v40 = vpop.eup %1709 }
 0x1a8   :  { %1610 = vmatprep.mubr.msk.f32.mxu1 %vm132_vm0, %v2010_v40 }
 0x1ab   :  { %v2014_v41 = vpop.eup %1711 }
 0x1ac   :  { %v2016_v42 = vpop.eup %1713  ;;  %1611 = vmatmul.mubr.msk.f32.vlgmr.msra.gmra.mxu1 %vm132_vm0, %v2014_v41 }
 0x1ad   :  { %1619 = vmatpush3.msra.mxu1 %v1984_v24  ;;  %1626 = vmatprep.mubr.msk.f32.mxu1 %vm132_vm0, %v2016_v42  ;;  %v2028_v43 = vpop.eup %1715 }
 0x1ae   :  { %1620 = vmatprep.subr.mxu1 %v1989_v25 }
 0x1af   :  { %1621 = vmatpush3.msra.mxu1 %v1989_v25 }
 0x1b0   :  { %1622 = vmatprep.subr.mxu1 %v1996_v26 }
 0x1b1   :  { %1623 = vmatpush3.msra.mxu1 %v1996_v26 }
 0x1b2   :  { %1624 = vmatprep.subr.mxu1 %v2005_v27 }
 0x1b3   :  { %1625 = vmatpush3.msra.mxu1 %v2005_v27 }
 0x1b4   :  { %1627 = vmatmul.mubr.msk.f32.vlgmr.msra.gmra.mxu1 %vm132_vm0, %v2028_v43  ;;  %1645 = vmatprep.subr.msk.mxu1 %vm490_vm1, %v114_v48 }
 0x1b5   :  { %1646 = vmatpush3.msk.msra.mxu1 %vm490_vm1, %v114_v48 }
 0x1b6   :  { %1650 = vmatprep.subr.mxu1 %v378_v1 }
 0x26c   :  { %v1612_v49 = vpop.f32.mrf.mxu1 }
 0x26d   :  { %v480_v50 = vmax.f32 %v1612_v49, 1e-30 }
 0x26e   :  { %v470_v51 = vpop.f32.mrf.mxu1 }
 0x26f   :  { %v479_v52 = vmax.f32 %v470_v51, 1e-30 }
 0x271   :  { %1717 = vrcp.f32 %v479_v52 }
 0x272   :  { %1719 = vrcp.f32 %v480_v50 }
 0x274   :  { %v1628_v53 = vpop.f32.mrf.mxu1 }
 0x275   :  { %v665_v54 = vmax.f32 %v1628_v53, 1e-30 }
 0x276   :  { %v655_v55 = vpop.f32.mrf.mxu1 }
 0x277   :  { %v664_v56 = vmax.f32 %v655_v55, 1e-30 }
 0x279   :  { %1721 = vrcp.f32 %v664_v56 }
 0x27a   :  { %1723 = vrcp.f32 %v665_v54 }
 0x27e   :  { %v1718_v57 = vpop.eup %1717 }
 0x27f   :  { %v1720_v58 = vpop.eup %1719  ;;  %1615 = vmatprep.mubr.msk.f32.mxu0 %vm483_vm2, %v1718_v57 }
 0x280   :  { %1616 = vmatmul.mubr.msk.f32.vlgmr.msra.gmra.mxu0 %vm483_vm2, %v1720_v58 }
 0x281   :  { %1630 = vmatpush3.msk.msra.mxu0 %vm490_vm1, %v114_v48 }
 0x282   :  { %1634 = vmatprep.subr.mxu0 %v1984_v24 }
 0x286   :  { %v1722_v59 = vpop.eup %1721 }
 0x287   :  { %v1724_v60 = vpop.eup %1723  ;;  %1631 = vmatprep.mubr.msk.f32.mxu0 %vm483_vm2, %v1722_v59 }
 0x288   :  { %1632 = vmatmul.mubr.msk.f32.vlgmr.msra.gmra.mxu0 %vm483_vm2, %v1724_v60 }
 0x289   :  { %1635 = vmatpush3.msra.mxu0 %v1984_v24 }
 0x28a   :  { %1636 = vmatprep.subr.mxu0 %v1989_v25 }
 0x28b   :  { %1637 = vmatpush3.msra.mxu0 %v1989_v25 }
 0x28c   :  { %1638 = vmatprep.subr.mxu0 %v1996_v26 }
 0x28d   :  { %1639 = vmatpush3.msra.mxu0 %v1996_v26 }
 0x28e   :  { %1640 = vmatprep.subr.mxu0 %v2005_v27 }
 0x28f   :  { %1641 = vmatpush3.msra.mxu0 %v2005_v27 }
 0x290   :  { %1658 = vmatprep.subr.mxu0 %v383_v63 }
 0x340   :  { %v1617_v2 = vpop.f32.mrf.mxu0 }
 0x341   :  { %v2067_v23 = vmul.f32 %v2014_v41, %v1617_v2  ;;  %v118_v41 = vld [vmem:[%s2119_s3 + $0x18] sm:$0xff] }
 0x342   :  { %v560_v3 = vpop.f32.mrf.mxu0 }
 0x343   :  { %v2064_v21 = vmul.f32 %v2010_v40, %v560_v3 }
 0x348   :  { %v1633_v4 = vpop.f32.mrf.mxu0 }
 0x349   :  { %v750_v5 = vmul.f32 %v2028_v43, %v1633_v4 }
 0x34a   :  { %v740_v6 = vpop.f32.mrf.mxu0 }
 0x34b   :  { %v758_v7 = vsel %vm132_vm0, %v750_v5, 0.0  ;;  %v749_v8 = vmul.f32 %v2016_v42, %v740_v6  ;;  %1061 = vxpose.xlu1.b32.start.end [1/1] (short) (narrow) %v750_v5, 32  ;;  %v116_v42 = vld [vmem:[%s2119_s3 + $0x8] sm:$0xff] }
 0x34c   :  { %v759_v9 = vrot.slane %v758_v7, 4 }
 0x34d   :  { %v751_v10 = vsel %vm132_vm0, %v749_v8, 0.0  ;;  %931 = vxpose.xlu0.b32.start.end [1/1] (short) (narrow) %v749_v8, 32 }
 0x34e   :  { %v760_v11 = vadd.f32 %v759_v9, %v758_v7  ;;  %v752_v12 = vrot.slane %v751_v10, 4  ;;  %v1495_v9 = vld [vmem:[%s2127_s11] ss:$0 sm:$0xff] }
 0x350   :  { %v761_v13 = vrot.slane %v760_v11, 2  ;;  %v753_v14 = vadd.f32 %v752_v12, %v751_v10 }
 0x352   :  { %v762_v15 = vadd.f32 %v761_v13, %v760_v11  ;;  %v754_v16 = vrot.slane %v753_v14, 2 }
 0x354   :  { %v763_v17 = vrot.slane %v762_v15, 1  ;;  %v755_v18 = vadd.f32 %v754_v16, %v753_v14 }
 0x356   :  { %v756_v19 = vrot.slane %v755_v18, 1  ;;  %v764_v20 = vadd.f32 %v763_v17, %v762_v15 }
 0x358   :  { %v757_v22 = vadd.f32 %v756_v19, %v755_v18  ;;  %v766_v25 = vmul.f32 %v764_v20, %v2067_v23 }
 0x35a   :  { %v765_v24 = vmul.f32 %v757_v22, %v2064_v21 }
 0x35c   :  { %1642 = vmatprep.mubr.msk.f32.mxu0 %vm132_vm0, %v765_v24 }
 0x35d   :  { %1643 = vmatmul.mubr.msk.f32.vlgmr.msra.gmra.mxu0 %vm132_vm0, %v766_v25 }
 0x35e   :  { %1659 = vmatpush3.msra.mxu0 %v383_v63  ;;  %v1349_v63 = vld [vmem:[#allocation10 + $0x8] sm:$0xff] }
 0x35f   :  { %1677 = vmatprep.subr.mxu0 %v1864_v30 }
 0x3c7   :  { %v1077_v26 = vpop.trf.xlu1 }
 0x3c8   :  { %1660 = vmatprep.mubr.msk.f32.mxu0 %vm963_vm3, %v1077_v26 }
 0x3c9   :  { %v947_v33 = vpop.trf.xlu0 }
 0x3cb   :  { %v1078_v27 = vpop.trf.xlu1 }
 0x3cc   :  { %1661 = vmatmul.mubr.msk.f32.vlgmr.msra.gmra.mxu0 %vm963_vm3, %v1078_v27 }
 0x3cd   :  { %v948_v34 = vpop.trf.xlu0 }
 0x3cf   :  { %v1079_v28 = vpop.trf.xlu1 }
 0x3d0   :  { %1663 = vmatprep.mubr.msk.f32.mxu0 %vm963_vm3, %v1079_v28 }
 0x3d1   :  { %v949_v37 = vpop.trf.xlu0 }
 0x3d3   :  { %v1080_v29 = vpop.trf.xlu1 }
 0x3d4   :  { %1664 = vmatmul.mubr.msk.f32.gmra.mxu0 %vm963_vm3, %v1080_v29 }
 0x3d5   :  { %1685 = vmatprep.mubr.msk.f32.mxu0 %vm1865_vm4, %v1864_v30  ;;  %v950_v38 = vpop.trf.xlu0 }
 0x41d   :  { %v1644_v31 = vpop.f32.mrf.mxu0 }
 0x41f   :  { %v839_v32 = vpop.f32.mrf.mxu0 }
 0x420   :  { %1725 = vrcp.f32 %v839_v32 }
 0x421   :  { %1727 = vrcp.f32 %v1644_v31 }
 0x42d   :  { %v1726_v35 = vpop.eup %1725 }
 0x42e   :  { %v1728_v36 = vpop.eup %1727  ;;  %1647 = vmatprep.mubr.msk.f32.mxu1 %vm483_vm2, %v1726_v35 }
 0x42f   :  { %1648 = vmatmul.mubr.msk.f32.vlgmr.msra.gmra.mxu1 %vm483_vm2, %v1728_v36 }
 0x430   :  { %1651 = vmatpush3.msra.mxu1 %v378_v1  ;;  %1652 = vmatprep.mubr.msk.f32.mxu1 %vm963_vm3, %v947_v33 }
 0x431   :  { %1666 = vmatprep.subr.mxu1 %v1864_v30 }
 0x433   :  { %1653 = vmatmul.mubr.msk.f32.vlgmr.msra.gmra.mxu1 %vm963_vm3, %v948_v34 }
 0x434   :  { %1655 = vmatprep.mubr.msk.f32.mxu1 %vm963_vm3, %v949_v37 }
 0x437   :  { %1656 = vmatmul.mubr.msk.f32.gmra.mxu1 %vm963_vm3, %v950_v38 }
 0x438   :  { %1674 = vmatprep.mubr.msk.f32.mxu1 %vm1865_vm4, %v1864_v30 }
 0x48c   :  { %v1662_v39 = vpop.f32.mrf.mxu0 }
 0x48d   :  { %v1195_v48 = vmul.f32 %v1662_v39, %v116_v42 }
 0x48e   :  { %v1171_v40 = vpop.f32.mrf.mxu0 }
 0x48f   :  { %v1194_v50 = vmul.f32 %v1171_v40, %v115_v46 }
 0x494   :  { %v1665_v43 = vpop.f32.mrf.mxu0 }
 0x495   :  { %v1197_v45 = vmul.f32 %v1665_v43, %v118_v41 }
 0x496   :  { %v1181_v47 = vpop.f32.mrf.mxu0 }
 0x497   :  { %v1196_v49 = vmul.f32 %v1181_v47, %v117_v44  ;;  %1678 = vmatpush3.msra.mxu0 %v1197_v45 }
 0x498   :  { %1679 = vmatprep.subr.mxu0 %v1864_v30 }
 0x499   :  { %1680 = vmatpush3.msra.mxu0 %v1196_v49 }
 0x49a   :  { %1681 = vmatprep.subr.mxu0 %v1864_v30 }
 0x49b   :  { %1682 = vmatpush3.msra.mxu0 %v1195_v48 }
 0x49c   :  { %1683 = vmatprep.subr.mxu0 %v1864_v30 }
 0x49d   :  { %1684 = vmatpush3.msra.mxu0 %v1194_v50 }
 0x49e   :  { %1686 = vmatmul.mubr.msk.f32.vlgmr.msra.gmra.mxu0 %vm132_vm0, %v2067_v23 }
 0x4ef   :  { %v1649_v51 = vpop.f32.mrf.mxu1 }
 0x4f1   :  { %v922_v52 = vpop.f32.mrf.mxu1 }
 0x4f3   :  { %v1654_v53 = vpop.f32.mrf.mxu1 }
 0x4f4   :  { %v1191_v59 = vmul.f32 %v1654_v53, %v116_v42 }
 0x4f5   :  { %v1042_v54 = vpop.f32.mrf.mxu1 }
 0x4f6   :  { %v1190_v60 = vmul.f32 %v1042_v54, %v115_v46 }
 0x4f7   :  { %v1657_v55 = vpop.f32.mrf.mxu1 }
 0x4f8   :  { %v1193_v56 = vmul.f32 %v1657_v55, %v118_v41 }
 0x4f9   :  { %v1052_v57 = vpop.f32.mrf.mxu1 }
 0x4fa   :  { %v1192_v58 = vmul.f32 %v1052_v57, %v117_v44  ;;  %1667 = vmatpush3.msra.mxu1 %v1193_v56 }
 0x4fb   :  { %1668 = vmatprep.subr.mxu1 %v1864_v30 }
 0x4fc   :  { %1669 = vmatpush3.msra.mxu1 %v1192_v58 }
 0x4fd   :  { %1670 = vmatprep.subr.mxu1 %v1864_v30 }
 0x4fe   :  { %1671 = vmatpush3.msra.mxu1 %v1191_v59 }
 0x4ff   :  { %1672 = vmatprep.subr.mxu1 %v1864_v30 }
 0x500   :  { %1673 = vmatpush3.msra.mxu1 %v1190_v60 }
 0x501   :  { %1675 = vmatmul.mubr.msk.f32.vlgmr.msra.gmra.mxu1 %vm132_vm0, %v2064_v21  ;;  %1688 = vmatprep.subr.mxu1 %v1351_v61 }
 0x502   :  { %1689 = vmatpush3.msra.mxu1 %v1351_v61 }
 0x503   :  { %1690 = vmatprep.subr.mxu1 %v1350_v62 }
 0x504   :  { %1691 = vmatpush3.msra.mxu1 %v1350_v62 }
 0x505   :  { %1692 = vmatprep.subr.mxu1 %v1349_v63 }
 0x506   :  { %1693 = vmatpush3.msra.mxu1 %v1349_v63 }
 0x507   :  { %1694 = vmatprep.subr.mxu1 %v1348_v0 }
 0x508   :  { %1695 = vmatpush3.msra.mxu1 %v1348_v0 }
 0x55e   :  { %v1340_v1 = vpop.f32.mrf.mxu0 }
 0x55f   :  { %v1345_v3 = vmul.f32 %v1649_v51, %v1340_v1 }
 0x560   :  { %v1687_v2 = vpop.f32.mrf.mxu0 }
 0x561   :  { %v1347_v8 = vadd.f32 %v1345_v3, %v2067_v23 }
 0x5c1   :  { %v1267_v4 = vpop.f32.mrf.mxu1 }
 0x5c2   :  { %v1344_v5 = vmul.f32 %v1267_v4, %v922_v52 }
 0x5c3   :  { %v1676_v6 = vpop.f32.mrf.mxu1 }
 0x5c4   :  { %v1346_v7 = vadd.f32 %v1344_v5, %v2064_v21 }
 0x5c6   :  { %1696 = vmatprep.mubr.msk.f32.mxu1 %vm132_vm0, %v1346_v7 }
 0x5c7   :  { %1697 = vmatmul.mubr.msk.f32.vlgmr.msra.gmra.mxu1 %vm132_vm0, %v1347_v8 }
 0x687   :  { %v1698_v10 = vpop.f32.mrf.mxu1 }
 0x688   :  { %v1437_v11 = vadd.f32 %v1698_v10, %v1495_v9 }
 0x689   :  { %v1431_v12 = vpop.f32.mrf.mxu1 }
 0x68a   :  { %1441 = vst.msk [vmem:[#allocation11 + $0x8] sm:$0xff] %vm132_vm0, %v1437_v11  ;;  %v1432_v13 = vadd.f32 %v1495_v9, %v1431_v12 }
 0x68c   :  { %1440 = vst.msk [vmem:[#allocation11] sm:$0xff] %vm132_vm0, %v1432_v13 }
 0x68d   :  { %1840 = shalt.err (!%p1837_p1)
}
 0x68e   :  { %1453 = dma.vmem_to_hbm [thread:$0]  %s1448_s6, 256, %s2128_s12, [#allocation4], %s1859_s26, %s1859_s26, %s1860_s27  }
 0x68f   :  { %1855 = dma.done.wait [#allocation4], 256  }
 0x690   :  { %1856 = vsyncadd [#allocation4], 4294967040 }
 0x691   :  { %1457 = vsyncpa [#allocation3], 1 }
 0x692   :  { %1458 = vsyncpa [#allocation6], 1 }
 0x693   :  { %1459 = vsyncpa [#allocation9], 1 }
 0x694   :  { %1460 = vsyncpa [#allocation4], 1 }

// kernel: tpu_custom_call.1
= control target key start
LH: loop header
LB: loop body
LE: loop exit
PB: predicated region body
PF: predicated region fallthrough
CT: control target
= control target key end

     0   :  { %17 = vsyncpa [#allocation3], 0  ;;  %s2116_s0 = inlined_call_operand.hbm [shape: f32[2,8,32], index: 0, kind: input, shape index: {}]   ;;  %s2117_s1 = inlined_call_operand.vmem [shape: f32[32,4], index: 1, kind: input, shape index: {}]   ;;  %s2118_s2 = inlined_call_operand.vmem [shape: f32[4,32], index: 2, kind: input, shape index: {}]   ;;  %s2119_s3 = inlined_call_operand.vmem [shape: f32[32,32], index: 3, kind: input, shape index: {}]   ;;  %s2120_s4 = inlined_call_operand.hbm [shape: f32[32,32], index: 4, kind: input, shape index: {}]   ;;  %s2121_s5 = inlined_call_operand.vmem [shape: f32[1,32], index: 5, kind: input, shape index: {}]   ;;  %s2122_s6 = inlined_call_operand.hbm [shape: f32[32,32], index: 6, kind: input, shape index: {}]   ;;  %s2123_s7 = inlined_call_operand.vmem [shape: f32[1,32], index: 7, kind: input, shape index: {}]   ;;  %s2124_s8 = inlined_call_operand.hbm [shape: f32[32,32], index: 8, kind: input, shape index: {}]   ;;  %s2125_s9 = inlined_call_operand.vmem [shape: f32[1,32], index: 9, kind: input, shape index: {}]   ;;  %s2126_s10 = inlined_call_operand.hbm [shape: f32[32,32], index: 10, kind: input, shape index: {}]   ;;  %s2127_s11 = inlined_call_operand.vmem [shape: f32[1,32], index: 11, kind: input, shape index: {}]   ;;  %s2128_s12 = inlined_call_operand.hbm [shape: f32[2,8,32], index: 12, kind: output, shape index: {}]  }
   0x1   :  { %18 = vsyncpa [#allocation6], 0 }
   0x2   :  { %19 = vsyncpa [#allocation9], 0 }
   0x3   :  { %20 = vsyncpa [#allocation4], 0  ;;  %s1857_s21 = smov [#allocation5]   ;;  %s1858_s23 = smov [#allocation8]  }
   0x4   :  { %s44_s22 = sshll.u32 %s1857_s21, 4  ;;  %s72_s24 = sshll.u32 %s1858_s23, 4  ;;  %s45_s22 = int_to_ptr.vmem [resolvable:$true] %s44_s22  ;;  %s73_s24 = int_to_ptr.vmem [resolvable:$true] %s72_s24 }
   0x5   :  { %s1737_s25 = scalar_lea.vmem %s45_s22, 512  ;;  %p1742_p1 = scmp.lt.s32.totalorder %s45_s22, %s45_s22 }
   0x6   :  { %p1738_p0 = scmp.ne.s32.totalorder %s45_s22, %s1737_s25  ;;  %p1743_p2 = scmp.lt.s32.totalorder %s1737_s25, %s1737_s25 }
   0x8   :  { %p1744_p3 = por %p1743_p2, %p1742_p1 }
   0xa   :  { %p1745_p4 = pnand %p1744_p3, %p1738_p0 }
   0xc   :  { %1748 = shalt.err (!%p1745_p4)
}
   0xd   :  { %s1859_s26 = smov 128   ;;  %s1860_s27 = smov 8  }
   0xe   :  { %50 = dma.hbm_to_vmem [thread:$0]  %s2120_s4, 512, %s45_s22, [#allocation6], %s1859_s26, %s1859_s26, %s1860_s27  }
   0xf   :  { %s1757_s30 = scalar_lea.vmem %s73_s24, 512  ;;  %p1762_p6 = scmp.lt.s32.totalorder %s73_s24, %s73_s24 }
  0x10   :  { %p1758_p5 = scmp.ne.s32.totalorder %s73_s24, %s1757_s30  ;;  %p1763_p7 = scmp.lt.s32.totalorder %s1757_s30, %s1757_s30 }
  0x12   :  { %p1764_p8 = por %p1763_p7, %p1762_p6 }
  0x14   :  { %p1765_p9 = pnand %p1764_p8, %p1758_p5 }
  0x16   :  { %1768 = shalt.err (!%p1765_p9)
}
  0x17   :  { %78 = dma.hbm_to_vmem [thread:$0]  %s2124_s8, 512, %s73_s24, [#allocation9], %s1859_s26, %s1859_s26, %s1860_s27  }
  0x18   :  { %s1861_s15 = smov [#allocation2]   ;;  %s1862_s17 = smov [#allocation7]  }
  0x19   :  { %s26_s16 = sshll.u32 %s1861_s15, 4  ;;  %s58_s18 = sshll.u32 %s1862_s17, 4  ;;  %s27_s16 = int_to_ptr.vmem [resolvable:$true] %s26_s16  ;;  %s59_s18 = int_to_ptr.vmem [resolvable:$true] %s58_s18 }
  0x1a   :  { %s1777_s4 = scalar_lea.vmem %s27_s16, 256  ;;  %p1782_p11 = scmp.lt.s32.totalorder %s27_s16, %s27_s16 }
  0x1b   :  { %p1778_p10 = scmp.ne.s32.totalorder %s27_s16, %s1777_s4  ;;  %p1783_p12 = scmp.lt.s32.totalorder %s1777_s4, %s1777_s4 }
  0x1d   :  { %p1784_p13 = por %p1783_p12, %p1782_p11 }
  0x1f   :  { %p1785_p0 = pnand %p1784_p13, %p1778_p10 }
  0x21   :  { %1788 = shalt.err (!%p1785_p0)
}
  0x22   :  { %32 = dma.hbm_to_vmem [thread:$0]  %s2116_s0, 256, %s27_s16, [#allocation3], %s1859_s26, %s1859_s26, %s1860_s27  }
  0x23   :  { %s1797_s8 = scalar_lea.vmem %s59_s18, 512  ;;  %p1802_p2 = scmp.lt.s32.totalorder %s59_s18, %s59_s18 }
  0x24   :  { %p1798_p1 = scmp.ne.s32.totalorder %s59_s18, %s1797_s8  ;;  %p1803_p3 = scmp.lt.s32.totalorder %s1797_s8, %s1797_s8 }
  0x26   :  { %p1804_p4 = por %p1803_p3, %p1802_p2 }
  0x28   :  { %p1805_p5 = pnand %p1804_p4, %p1798_p1 }
  0x2a   :  { %1808 = shalt.err (!%p1805_p5)
}
  0x2b   :  { %64 = dma.hbm_to_vmem [thread:$0]  %s2122_s6, 512, %s59_s18, [#allocation6], %s1859_s26, %s1859_s26, %s1860_s27  }
  0x2c   :  { %s1863_s23 = smov [#allocation10]  }
  0x2d   :  { %s86_s24 = sshll.u32 %s1863_s23, 4  ;;  %s87_s24 = int_to_ptr.vmem [resolvable:$true] %s86_s24 }
  0x2e   :  { %s1817_s25 = scalar_lea.vmem %s87_s24, 512  ;;  %p1822_p7 = scmp.lt.s32.totalorder %s87_s24, %s87_s24 }
  0x2f   :  { %p1818_p6 = scmp.ne.s32.totalorder %s87_s24, %s1817_s25  ;;  %p1823_p8 = scmp.lt.s32.totalorder %s1817_s25, %s1817_s25 }
  0x31   :  { %p1824_p9 = por %p1823_p8, %p1822_p7 }
  0x33   :  { %p1825_p10 = pnand %p1824_p9, %p1818_p6 }
  0x35   :  { %1828 = shalt.err (!%p1825_p10)
}
  0x36   :  { %92 = dma.hbm_to_vmem [thread:$0]  %s2126_s10, 512, %s87_s24, [#allocation9], %s1859_s26, %s1859_s26, %s1860_s27  }
  0x37   :  { %1849 = dma.done.wait [#allocation3], 256  }
  0x38   :  { %1850 = vsyncadd [#allocation3], 4294967040 }
  0x39   :  { %1851 = dma.done.wait [#allocation6], 1024  }
  0x3a   :  { %1852 = vsyncadd [#allocation6], 4294966272 }
  0x3b   :  { %1853 = dma.done.wait [#allocation9], 1024  }
  0x3c   :  { %1854 = vsyncadd [#allocation9], 4294966272  ;;  %v124_v0 = vld [vmem:[#allocation5 + $0x18] sm:$0xff]  ;;  %v123_v2 = vld [vmem:[#allocation5 + $0x10] sm:$0xff]  ;;  %vm132_vm0 = vcmask 261120   ;;  %vm490_vm1 = vcmask 1043456  }
  0x3d   :  { %v217_v1 = vld [vmem:[#allocation7 + $0x18] sm:$0xff]  ;;  %1569 = vmatprep.subr.mxu0 %v124_v0  ;;  %v216_v3 = vld [vmem:[#allocation7 + $0x10] sm:$0xff]  ;;  %v122_v4 = vld [vmem:[#allocation5 + $0x8] sm:$0xff]  ;;  %vm483_vm2 = vcmask 31744   ;;  %vm963_vm3 = vcmask 64512   ;;  %vm1865_vm4 = vmmov 0  }
  0x3e   :  { %1580 = vmatprep.subr.mxu1 %v217_v1  ;;  %1570 = vmatpush3.msra.mxu0 %v124_v0  ;;  %v215_v5 = vld [vmem:[#allocation7 + $0x8] sm:$0xff]  ;;  %v121_v6 = vld [vmem:[#allocation5] sm:$0xff]  ;;  %v119_v8 = vld [vmem:[#allocation2] sm:$0xff]  ;;  %s1866_s28 = smov [#allocation11]  }
  0x3f   :  { %1581 = vmatpush3.msra.mxu1 %v217_v1  ;;  %1571 = vmatprep.subr.mxu0 %v123_v2  ;;  %v214_v7 = vld [vmem:[#allocation7] sm:$0xff]  ;;  %v1962_v9 = vld [vmem:[#allocation2 + $0x8] sm:$0xff]  ;;  %v1464_v12 = vld [vmem:[%s2123_s7] ss:$0 sm:$0xff]  ;;  %s1447_s6 = sshll.u32 %s1866_s28, 4  ;;  %s1448_s6 = int_to_ptr.vmem [resolvable:$true] %s1447_s6 }
  0x40   :  { %1582 = vmatprep.subr.mxu1 %v216_v3  ;;  %1572 = vmatpush3.msra.mxu0 %v123_v2  ;;  %v1461_v13 = vld [vmem:[%s2121_s5] ss:$0 sm:$0xff]  ;;  %v1984_v24 = vld [vmem:[%s2117_s1 + $0x18] sm:$0xff]  ;;  %v1989_v25 = vld [vmem:[%s2117_s1 + $0x10] sm:$0xff]  ;;  %s1829_s10 = scalar_lea.vmem %s1448_s6, 256  ;;  %p1834_p12 = scmp.lt.s32.totalorder %s1448_s6, %s1448_s6 }
  0x41   :  { %1583 = vmatpush3.msra.mxu1 %v216_v3  ;;  %1573 = vmatprep.subr.mxu0 %v122_v4  ;;  %v1996_v26 = vld [vmem:[%s2117_s1 + $0x8] sm:$0xff]  ;;  %v2005_v27 = vld [vmem:[%s2117_s1] sm:$0xff]  ;;  %v301_v46 = vld [vmem:[#allocation8 + $0x8] sm:$0xff]  ;;  %p1830_p11 = scmp.ne.s32.totalorder %s1448_s6, %s1829_s10  ;;  %p1835_p13 = scmp.lt.s32.totalorder %s1829_s10, %s1829_s10 }
  0x42   :  { %1584 = vmatprep.subr.mxu1 %v215_v5  ;;  %1574 = vmatpush3.msra.mxu0 %v122_v4  ;;  %v303_v44 = vld [vmem:[#allocation8 + $0x18] sm:$0xff]  ;;  %v302_v45 = vld [vmem:[#allocation8 + $0x10] sm:$0xff]  ;;  %v300_v47 = vld [vmem:[#allocation8] sm:$0xff] }
  0x43   :  { %1585 = vmatpush3.msra.mxu1 %v215_v5  ;;  %1575 = vmatprep.subr.mxu0 %v121_v6  ;;  %v114_v48 = vld [vmem:[%s2118_s2] sm:$0xf]  ;;  %p1836_p0 = por %p1835_p13, %p1834_p12 }
  0x44   :  { %1586 = vmatprep.subr.mxu1 %v214_v7  ;;  %1576 = vmatpush3.msra.mxu0 %v121_v6  ;;  %v1467_v61 = vld [vmem:[%s2125_s9] ss:$0 sm:$0xff] }
  0x45   :  { %1577 = vmatprep.mubr.msk.f32.mxu0 %vm132_vm0, %v119_v8  ;;  %1587 = vmatpush3.msra.mxu1 %v214_v7  ;;  %p1837_p1 = pnand %p1836_p0, %p1830_p11 }
  0x46   :  { %1588 = vmatprep.mubr.msk.f32.mxu1 %vm132_vm0, %v119_v8  ;;  %1578 = vmatmul.mubr.msk.f32.vlgmr.msra.gmra.mxu0 %vm132_vm0, %v1962_v9 }
  0x47   :  { %1589 = vmatmul.mubr.msk.f32.vlgmr.msra.gmra.mxu1 %vm132_vm0, %v1962_v9  ;;  %1599 = vmatprep.mubr.msk.f32.mxu0 %vm132_vm0, %v119_v8 }
  0x48   :  { %1602 = vmatprep.subr.mxu1 %v1984_v24  ;;  %1591 = vmatprep.subr.mxu0 %v303_v44 }
  0x49   :  { %1603 = vmatpush3.msra.mxu1 %v1984_v24  ;;  %1592 = vmatpush3.msra.mxu0 %v303_v44  ;;  %v117_v44 = vld [vmem:[%s2119_s3 + $0x10] sm:$0xff] }
  0x4a   :  { %1604 = vmatprep.subr.mxu1 %v1989_v25  ;;  %1593 = vmatprep.subr.mxu0 %v302_v45 }
  0x4b   :  { %1605 = vmatpush3.msra.mxu1 %v1989_v25  ;;  %1594 = vmatpush3.msra.mxu0 %v302_v45 }
  0x4c   :  { %1606 = vmatprep.subr.mxu1 %v1996_v26  ;;  %1595 = vmatprep.subr.mxu0 %v301_v46 }
  0x4d   :  { %1607 = vmatpush3.msra.mxu1 %v1996_v26  ;;  %1596 = vmatpush3.msra.mxu0 %v301_v46  ;;  %v115_v46 = vld [vmem:[%s2119_s3] sm:$0xff] }
  0x4e   :  { %1608 = vmatprep.subr.mxu1 %v2005_v27  ;;  %1597 = vmatprep.subr.mxu0 %v300_v47 }
  0x4f   :  { %1609 = vmatpush3.msra.mxu1 %v2005_v27  ;;  %1598 = vmatpush3.msra.mxu0 %v300_v47 }
  0x50   :  { %1618 = vmatprep.subr.mxu1 %v1984_v24  ;;  %1600 = vmatmul.mubr.msk.f32.vlgmr.msra.gmra.mxu0 %vm132_vm0, %v1962_v9 }
  0x51   :  { %1613 = vmatprep.subr.msk.mxu0 %vm490_vm1, %v114_v48 }
  0x52   :  { %1614 = vmatpush3.msk.msra.mxu0 %vm490_vm1, %v114_v48 }
  0x53   :  { %1629 = vmatprep.subr.msk.mxu0 %vm490_vm1, %v114_v48 }
 0x106   :  { %v1579_v10 = vpop.f32.mrf.mxu0 }
 0x107   :  { %v1590_v11 = vpop.f32.mrf.mxu1  ;;  %v211_v19 = vadd.f32 %v1579_v10, %v1461_v13 }
 0x108   :  { %v205_v14 = vpop.f32.mrf.mxu0  ;;  %v297_v16 = vadd.f32 %v1590_v11, %v1464_v12 }
 0x109   :  { %v291_v15 = vpop.f32.mrf.mxu1  ;;  %v206_v17 = vadd.f32 %v1461_v13, %v205_v14  ;;  %v389_v23 = vsel %vm132_vm0, %v211_v19, -inf }
 0x10a   :  { %v292_v18 = vadd.f32 %v1464_v12, %v291_v15  ;;  %v574_v22 = vsel %vm132_vm0, %v297_v16, -inf }
 0x10b   :  { %v386_v21 = vsel %vm132_vm0, %v206_v17, -inf }
 0x10c   :  { %v571_v20 = vsel %vm132_vm0, %v292_v18, -inf  ;;  %387 = vmax.xlane.f32.xlu0 %v386_v21 }
 0x10d   :  { %572 = vmax.xlane.f32.xlu1 %v571_v20 }
 0x110   :  { %390 = vmax.xlane.f32.xlu0 %v389_v23  ;;  %v1601_v62 = vpop.f32.mrf.mxu0 }
 0x111   :  { %575 = vmax.xlane.f32.xlu1 %v574_v22  ;;  %v383_v63 = vadd.f32 %v1601_v62, %v1467_v61  ;;  %v1350_v62 = vld [vmem:[#allocation10 + $0x10] sm:$0xff] }
 0x112   :  { %v377_v0 = vpop.f32.mrf.mxu0 }
 0x113   :  { %v378_v1 = vadd.f32 %v1467_v61, %v377_v0  ;;  %v1351_v61 = vld [vmem:[#allocation10 + $0x18] sm:$0xff]  ;;  %v1348_v0 = vld [vmem:[#allocation10] sm:$0xff] }
 0x195   :  { %v388_v29 = vpop.xlane.xlu0 %387 }
 0x196   :  { %v573_v28 = vpop.xlane.xlu1 %572  ;;  %v392_v30 = vsub.f32 %v206_v17, %v388_v29 }
 0x197   :  { %v577_v31 = vsub.f32 %v292_v18, %v573_v28 }
 0x198   :  { %v394_v32 = vmul.f32 1.442695, %v392_v30  ;;  %v1864_v30 = vmov 0.0  }
 0x199   :  { %v391_v33 = vpop.xlane.xlu0 %390  ;;  %v579_v35 = vmul.f32 1.442695, %v577_v31 }
 0x19a   :  { %v393_v34 = vsub.f32 %v211_v19, %v391_v33  ;;  %1709 = vpow2.f32 %v394_v32  ;;  %v576_v36 = vpop.xlane.xlu1 %575 }
 0x19b   :  { %v578_v38 = vsub.f32 %v297_v16, %v576_v36 }
 0x19c   :  { %v396_v37 = vmul.f32 1.442695, %v393_v34 }
 0x19d   :  { %v581_v39 = vmul.f32 1.442695, %v578_v38 }
 0x19e   :  { %1711 = vpow2.f32 %v396_v37 }
 0x19f   :  { %1713 = vpow2.f32 %v579_v35 }
 0x1a0   :  { %1715 = vpow2.f32 %v581_v39 }
 0x1a7   :  { %v2010_v40 = vpop.eup %1709 }
 0x1a8   :  { %1610 = vmatprep.mubr.msk.f32.mxu1 %vm132_vm0, %v2010_v40 }
 0x1ab   :  { %v2014_v41 = vpop.eup %1711 }
 0x1ac   :  { %v2016_v42 = vpop.eup %1713  ;;  %1611 = vmatmul.mubr.msk.f32.vlgmr.msra.gmra.mxu1 %vm132_vm0, %v2014_v41 }
 0x1ad   :  { %1619 = vmatpush3.msra.mxu1 %v1984_v24  ;;  %1626 = vmatprep.mubr.msk.f32.mxu1 %vm132_vm0, %v2016_v42  ;;  %v2028_v43 = vpop.eup %1715 }
 0x1ae   :  { %1620 = vmatprep.subr.mxu1 %v1989_v25 }
 0x1af   :  { %1621 = vmatpush3.msra.mxu1 %v1989_v25 }
 0x1b0   :  { %1622 = vmatprep.subr.mxu1 %v1996_v26 }
 0x1b1   :  { %1623 = vmatpush3.msra.mxu1 %v1996_v26 }
 0x1b2   :  { %1624 = vmatprep.subr.mxu1 %v2005_v27 }
 0x1b3   :  { %1625 = vmatpush3.msra.mxu1 %v2005_v27 }
 0x1b4   :  { %1627 = vmatmul.mubr.msk.f32.vlgmr.msra.gmra.mxu1 %vm132_vm0, %v2028_v43  ;;  %1645 = vmatprep.subr.msk.mxu1 %vm490_vm1, %v114_v48 }
 0x1b5   :  { %1646 = vmatpush3.msk.msra.mxu1 %vm490_vm1, %v114_v48 }
 0x1b6   :  { %1650 = vmatprep.subr.mxu1 %v378_v1 }
 0x26c   :  { %v1612_v49 = vpop.f32.mrf.mxu1 }
 0x26d   :  { %v480_v50 = vmax.f32 %v1612_v49, 1e-30 }
 0x26e   :  { %v470_v51 = vpop.f32.mrf.mxu1 }
 0x26f   :  { %v479_v52 = vmax.f32 %v470_v51, 1e-30 }
 0x271   :  { %1717 = vrcp.f32 %v479_v52 }
 0x272   :  { %1719 = vrcp.f32 %v480_v50 }
 0x274   :  { %v1628_v53 = vpop.f32.mrf.mxu1 }
 0x275   :  { %v665_v54 = vmax.f32 %v1628_v53, 1e-30 }
 0x276   :  { %v655_v55 = vpop.f32.mrf.mxu1 }
 0x277   :  { %v664_v56 = vmax.f32 %v655_v55, 1e-30 }
 0x279   :  { %1721 = vrcp.f32 %v664_v56 }
 0x27a   :  { %1723 = vrcp.f32 %v665_v54 }
 0x27e   :  { %v1718_v57 = vpop.eup %1717 }
 0x27f   :  { %v1720_v58 = vpop.eup %1719  ;;  %1615 = vmatprep.mubr.msk.f32.mxu0 %vm483_vm2, %v1718_v57 }
 0x280   :  { %1616 = vmatmul.mubr.msk.f32.vlgmr.msra.gmra.mxu0 %vm483_vm2, %v1720_v58 }
 0x281   :  { %1630 = vmatpush3.msk.msra.mxu0 %vm490_vm1, %v114_v48 }
 0x282   :  { %1634 = vmatprep.subr.mxu0 %v1984_v24 }
 0x286   :  { %v1722_v59 = vpop.eup %1721 }
 0x287   :  { %v1724_v60 = vpop.eup %1723  ;;  %1631 = vmatprep.mubr.msk.f32.mxu0 %vm483_vm2, %v1722_v59 }
 0x288   :  { %1632 = vmatmul.mubr.msk.f32.vlgmr.msra.gmra.mxu0 %vm483_vm2, %v1724_v60 }
 0x289   :  { %1635 = vmatpush3.msra.mxu0 %v1984_v24 }
 0x28a   :  { %1636 = vmatprep.subr.mxu0 %v1989_v25 }
 0x28b   :  { %1637 = vmatpush3.msra.mxu0 %v1989_v25 }
 0x28c   :  { %1638 = vmatprep.subr.mxu0 %v1996_v26 }
 0x28d   :  { %1639 = vmatpush3.msra.mxu0 %v1996_v26 }
 0x28e   :  { %1640 = vmatprep.subr.mxu0 %v2005_v27 }
 0x28f   :  { %1641 = vmatpush3.msra.mxu0 %v2005_v27 }
 0x290   :  { %1658 = vmatprep.subr.mxu0 %v383_v63 }
 0x340   :  { %v1617_v2 = vpop.f32.mrf.mxu0 }
 0x341   :  { %v2067_v23 = vmul.f32 %v2014_v41, %v1617_v2  ;;  %v118_v41 = vld [vmem:[%s2119_s3 + $0x18] sm:$0xff] }
 0x342   :  { %v560_v3 = vpop.f32.mrf.mxu0 }
 0x343   :  { %v2064_v21 = vmul.f32 %v2010_v40, %v560_v3 }
 0x348   :  { %v1633_v4 = vpop.f32.mrf.mxu0 }
 0x349   :  { %v750_v5 = vmul.f32 %v2028_v43, %v1633_v4 }
 0x34a   :  { %v740_v6 = vpop.f32.mrf.mxu0 }
 0x34b   :  { %v758_v7 = vsel %vm132_vm0, %v750_v5, 0.0  ;;  %v749_v8 = vmul.f32 %v2016_v42, %v740_v6  ;;  %1061 = vxpose.xlu1.b32.start.end [1/1] (short) (narrow) %v750_v5, 32  ;;  %v116_v42 = vld [vmem:[%s2119_s3 + $0x8] sm:$0xff] }
 0x34c   :  { %v759_v9 = vrot.slane %v758_v7, 4 }
 0x34d   :  { %v751_v10 = vsel %vm132_vm0, %v749_v8, 0.0  ;;  %931 = vxpose.xlu0.b32.start.end [1/1] (short) (narrow) %v749_v8, 32 }
 0x34e   :  { %v760_v11 = vadd.f32 %v759_v9, %v758_v7  ;;  %v752_v12 = vrot.slane %v751_v10, 4  ;;  %v1495_v9 = vld [vmem:[%s2127_s11] ss:$0 sm:$0xff] }
 0x350   :  { %v761_v13 = vrot.slane %v760_v11, 2  ;;  %v753_v14 = vadd.f32 %v752_v12, %v751_v10 }
 0x352   :  { %v762_v15 = vadd.f32 %v761_v13, %v760_v11  ;;  %v754_v16 = vrot.slane %v753_v14, 2 }
 0x354   :  { %v763_v17 = vrot.slane %v762_v15, 1  ;;  %v755_v18 = vadd.f32 %v754_v16, %v753_v14 }
 0x356   :  { %v756_v19 = vrot.slane %v755_v18, 1  ;;  %v764_v20 = vadd.f32 %v763_v17, %v762_v15 }
 0x358   :  { %v757_v22 = vadd.f32 %v756_v19, %v755_v18  ;;  %v766_v25 = vmul.f32 %v764_v20, %v2067_v23 }
 0x35a   :  { %v765_v24 = vmul.f32 %v757_v22, %v2064_v21 }
 0x35c   :  { %1642 = vmatprep.mubr.msk.f32.mxu0 %vm132_vm0, %v765_v24 }
 0x35d   :  { %1643 = vmatmul.mubr.msk.f32.vlgmr.msra.gmra.mxu0 %vm132_vm0, %v766_v25 }
 0x35e   :  { %1659 = vmatpush3.msra.mxu0 %v383_v63  ;;  %v1349_v63 = vld [vmem:[#allocation10 + $0x8] sm:$0xff] }
 0x35f   :  { %1677 = vmatprep.subr.mxu0 %v1864_v30 }
 0x3c7   :  { %v1077_v26 = vpop.trf.xlu1 }
 0x3c8   :  { %1660 = vmatprep.mubr.msk.f32.mxu0 %vm963_vm3, %v1077_v26 }
 0x3c9   :  { %v947_v33 = vpop.trf.xlu0 }
 0x3cb   :  { %v1078_v27 = vpop.trf.xlu1 }
 0x3cc   :  { %1661 = vmatmul.mubr.msk.f32.vlgmr.msra.gmra.mxu0 %vm963_vm3, %v1078_v27 }
 0x3cd   :  { %v948_v34 = vpop.trf.xlu0 }
 0x3cf   :  { %v1079_v28 = vpop.trf.xlu1 }
 0x3d0   :  { %1663 = vmatprep.mubr.msk.f32.mxu0 %vm963_vm3, %v1079_v28 }
 0x3d1   :  { %v949_v37 = vpop.trf.xlu0 }
 0x3d3   :  { %v1080_v29 = vpop.trf.xlu1 }
 0x3d4   :  { %1664 = vmatmul.mubr.msk.f32.gmra.mxu0 %vm963_vm3, %v1080_v29 }
 0x3d5   :  { %1685 = vmatprep.mubr.msk.f32.mxu0 %vm1865_vm4, %v1864_v30  ;;  %v950_v38 = vpop.trf.xlu0 }
 0x41d   :  { %v1644_v31 = vpop.f32.mrf.mxu0 }
 0x41f   :  { %v839_v32 = vpop.f32.mrf.mxu0 }
 0x420   :  { %1725 = vrcp.f32 %v839_v32 }
 0x421   :  { %1727 = vrcp.f32 %v1644_v31 }
 0x42d   :  { %v1726_v35 = vpop.eup %1725 }
 0x42e   :  { %v1728_v36 = vpop.eup %1727  ;;  %1647 = vmatprep.mubr.msk.f32.mxu1 %vm483_vm2, %v1726_v35 }
 0x42f   :  { %1648 = vmatmul.mubr.msk.f32.vlgmr.msra.gmra.mxu1 %vm483_vm2, %v1728_v36 }
 0x430   :  { %1651 = vmatpush3.msra.mxu1 %v378_v1  ;;  %1652 = vmatprep.mubr.msk.f32.mxu1 %vm963_vm3, %v947_v33 }
 0x431   :  { %1666 = vmatprep.subr.mxu1 %v1864_v30 }
 0x433   :  { %1653 = vmatmul.mubr.msk.f32.vlgmr.msra.gmra.mxu1 %vm963_vm3, %v948_v34 }
 0x434   :  { %1655 = vmatprep.mubr.msk.f32.mxu1 %vm963_vm3, %v949_v37 }
 0x437   :  { %1656 = vmatmul.mubr.msk.f32.gmra.mxu1 %vm963_vm3, %v950_v38 }
 0x438   :  { %1674 = vmatprep.mubr.msk.f32.mxu1 %vm1865_vm4, %v1864_v30 }
 0x48c   :  { %v1662_v39 = vpop.f32.mrf.mxu0 }
 0x48d   :  { %v1195_v48 = vmul.f32 %v1662_v39, %v116_v42 }
 0x48e   :  { %v1171_v40 = vpop.f32.mrf.mxu0 }
 0x48f   :  { %v1194_v50 = vmul.f32 %v1171_v40, %v115_v46 }
 0x494   :  { %v1665_v43 = vpop.f32.mrf.mxu0 }
 0x495   :  { %v1197_v45 = vmul.f32 %v1665_v43, %v118_v41 }
 0x496   :  { %v1181_v47 = vpop.f32.mrf.mxu0 }
 0x497   :  { %v1196_v49 = vmul.f32 %v1181_v47, %v117_v44  ;;  %1678 = vmatpush3.msra.mxu0 %v1197_v45 }
 0x498   :  { %1679 = vmatprep.subr.mxu0 %v1864_v30 }
 0x499   :  { %1680 = vmatpush3.msra.mxu0 %v1196_v49 }
 0x49a   :  { %1681 = vmatprep.subr.mxu0 %v1864_v30 }
 0x49b   :  { %1682 = vmatpush3.msra.mxu0 %v1195_v48 }
 0x49c   :  { %1683 = vmatprep.subr.mxu0 %v1864_v30 }
 0x49d   :  { %1684 = vmatpush3.msra.mxu0 %v1194_v50 }
 0x49e   :  { %1686 = vmatmul.mubr.msk.f32.vlgmr.msra.gmra.mxu0 %vm132_vm0, %v2067_v23 }
 0x4ef   :  { %v1649_v51 = vpop.f32.mrf.mxu1 }
 0x4f1   :  { %v922_v52 = vpop.f32.mrf.mxu1 }
 0x4f3   :  { %v1654_v53 = vpop.f32.mrf.mxu1 }
 0x4f4   :  { %v1191_v59 = vmul.f32 %v1654_v53, %v116_v42 }
 0x4f5   :  { %v1042_v54 = vpop.f32.mrf.mxu1 }
 0x4f6   :  { %v1190_v60 = vmul.f32 %v1042_v54, %v115_v46 }
 0x4f7   :  { %v1657_v55 = vpop.f32.mrf.mxu1 }
 0x4f8   :  { %v1193_v56 = vmul.f32 %v1657_v55, %v118_v41 }
 0x4f9   :  { %v1052_v57 = vpop.f32.mrf.mxu1 }
 0x4fa   :  { %v1192_v58 = vmul.f32 %v1052_v57, %v117_v44  ;;  %1667 = vmatpush3.msra.mxu1 %v1193_v56 }
 0x4fb   :  { %1668 = vmatprep.subr.mxu1 %v1864_v30 }
 0x4fc   :  { %1669 = vmatpush3.msra.mxu1 %v1192_v58 }
 0x4fd   :  { %1670 = vmatprep.subr.mxu1 %v1864_v30 }
 0x4fe   :  { %1671 = vmatpush3.msra.mxu1 %v1191_v59 }
 0x4ff   :  { %1672 = vmatprep.subr.mxu1 %v1864_v30 }
 0x500   :  { %1673 = vmatpush3.msra.mxu1 %v1190_v60 }
 0x501   :  { %1675 = vmatmul.mubr.msk.f32.vlgmr.msra.gmra.mxu1 %vm132_vm0, %v2064_v21  ;;  %1688 = vmatprep.subr.mxu1 %v1351_v61 }
 0x502   :  { %1689 = vmatpush3.msra.mxu1 %v1351_v61 }
 0x503   :  { %1690 = vmatprep.subr.mxu1 %v1350_v62 }
 0x504   :  { %1691 = vmatpush3.msra.mxu1 %v1350_v62 }
 0x505   :  { %1692 = vmatprep.subr.mxu1 %v1349_v63 }
 0x506   :  { %1693 = vmatpush3.msra.mxu1 %v1349_v63 }
 0x507   :  { %1694 = vmatprep.subr.mxu1 %v1348_v0 }
 0x508   :  { %1695 = vmatpush3.msra.mxu1 %v1348_v0 }
 0x55e   :  { %v1340_v1 = vpop.f32.mrf.mxu0 }
 0x55f   :  { %v1345_v3 = vmul.f32 %v1649_v51, %v1340_v1 }
 0x560   :  { %v1687_v2 = vpop.f32.mrf.mxu0 }
 0x561   :  { %v1347_v8 = vadd.f32 %v1345_v3, %v2067_v23 }
 0x5c1   :  { %v1267_v4 = vpop.f32.mrf.mxu1 }
 0x5c2   :  { %v1344_v5 = vmul.f32 %v1267_v4, %v922_v52 }
 0x5c3   :  { %v1676_v6 = vpop.f32.mrf.mxu1 }
 0x5c4   :  { %v1346_v7 = vadd.f32 %v1344_v5, %v2064_v21 }
 0x5c6   :  { %1696 = vmatprep.mubr.msk.f32.mxu1 %vm132_vm0, %v1346_v7 }
 0x5c7   :  { %1697 = vmatmul.mubr.msk.f32.vlgmr.msra.gmra.mxu1 %vm132_vm0, %v1347_v8 }
 0x687   :  { %v1698_v10 = vpop.f32.mrf.mxu1 }
 0x688   :  { %v1437_v11 = vadd.f32 %v1698_v10, %v1495_v9 }
 0x689   :  { %v1431_v12 = vpop.f32.mrf.mxu1 }
 0x68a   :  { %1441 = vst.msk [vmem:[#allocation11 + $0x8] sm:$0xff] %vm132_vm0, %v1437_v11  ;;  %v1432_v13 = vadd.f32 %v1495_v9, %v1431_v12 }
 0x68c   :  { %1440 = vst.msk [vmem:[#allocation11] sm:$0xff] %vm132_vm0, %v1432_v13 }
 0x68d   :  { %1840 = shalt.err (!%p1837_p1)
}
 0x68e   :  { %1453 = dma.vmem_to_hbm [thread:$0]  %s1448_s6, 256, %s2128_s12, [#allocation4], %s1859_s26, %s1859_s26, %s1860_s27  }
 0x68f   :  { %1855 = dma.done.wait [#allocation4], 256  }
 0x690   :  { %1856 = vsyncadd [#allocation4], 4294967040 }
 0x691   :  { %1457 = vsyncpa [#allocation3], 1 }
 0x692   :  { %1458 = vsyncpa [#allocation6], 1 }
 0x693   :  { %1459 = vsyncpa [#allocation9], 1 }
 0x694   :  { %1460 = vsyncpa [#allocation4], 1 }

</bundles_post_ra>
